<compile_context>
chip_gen: v5e
topology: v5e:2x2
jax: 0.10.0
libtpu: 0.0.40
codegen_flags: <defaults>
</compile_context>

<pallas_src>
import jax
import jax.numpy as jnp
from jax.experimental import pallas as pl
from jax.experimental.pallas import tpu as pltpu


def _mlp_kernel(x_ref, w1_ref, b1_ref, w2_ref, b2_ref, w3_ref, b3_ref, o_ref):
    # x tile: (TB, I) in compute dtype; weights in compute dtype; biases f32.
    x = x_ref[...]

    # fc1 + ReLU  (MXU in compute dtype, f32 accumulate; elementwise in f32)
    h1 = jnp.dot(x, w1_ref[...], preferred_element_type=jnp.float32)
    h1 = jnp.maximum(h1 + b1_ref[...], 0.0)

    # fc2 + ReLU
    h2 = jnp.dot(h1.astype(w2_ref.dtype), w2_ref[...],
                 preferred_element_type=jnp.float32)
    h2 = jnp.maximum(h2 + b2_ref[...], 0.0)

    # fc3 (output padded to a lane-dense 128-wide slab)
    out = jnp.dot(h2.astype(w3_ref.dtype), w3_ref[...],
                  preferred_element_type=jnp.float32)
    o_ref[...] = (out + b3_ref[...]).astype(o_ref.dtype)


def _round_up(x, m):
    return (x + m - 1) // m * m


def mlp_forward(x, params, *, compute_dtype=jnp.float32, batch_tile=512):
    """Forward pass matching network.forward (fc1->ReLU->fc2->ReLU->fc3).

    x: float array with leading batch dim; flattened to (B, input_shape)
       exactly like torch's `x.view(x.shape[0], -1)`.
    params: dict with w1 (I,H), b1 (H,), w2 (H,H), b2 (H,), w3 (H,O), b3 (O,)
    compute_dtype: dtype fed to the MXU (jnp.float32 or jnp.bfloat16);
       accumulation / bias / ReLU always f32.
    """
    x = jnp.asarray(x, jnp.float32)
    b = x.shape[0]
    x = x.reshape(b, -1)                              # torch .view(B, -1)
    in_dim = x.shape[1]

    w1, b1 = params["w1"], params["b1"]
    w2, b2 = params["w2"], params["b2"]
    w3, b3 = params["w3"], params["b3"]
    hidden = w1.shape[1]
    out_dim = w3.shape[1]

    # --- lane-dense output: pad fc3 to a multiple of 128 output columns ----
    out_pad = _round_up(max(out_dim, 128), 128)
    w3_p = jnp.zeros((hidden, out_pad), jnp.float32).at[:, :out_dim].set(w3)
    b3_p = jnp.zeros((out_pad,), jnp.float32).at[:out_dim].set(b3)

    # --- batch tiling: TB rows per grid step, batch padded to TB multiple ---
    tb = min(batch_tile, _round_up(b, 8))
    b_pad = _round_up(b, tb)
    if b_pad != b:
        x = jnp.pad(x, ((0, b_pad - b), (0, 0)))

    # MXU input dtype (bf16 recommended on v6e/v7x for large batch).
    x_c = x.astype(compute_dtype)
    w1_c = w1.astype(compute_dtype)
    w2_c = w2.astype(compute_dtype)
    w3_c = w3_p.astype(compute_dtype)

    # Biases kept 2-D (1, N), f32 (elementwise path stays f32 for v5e VPU).
    b1_2d = b1.reshape(1, hidden).astype(jnp.float32)
    b2_2d = b2.reshape(1, hidden).astype(jnp.float32)
    b3_2d = b3_p.reshape(1, out_pad).astype(jnp.float32)

    grid = (b_pad // tb,)

    out_padded = pl.pallas_call(
        _mlp_kernel,
        out_shape=jax.ShapeDtypeStruct((b_pad, out_pad), jnp.float32),
        grid_spec=pltpu.PrefetchScalarGridSpec(
            num_scalar_prefetch=0,
            grid=grid,
            in_specs=[
                # x tiles streamed over the batch axis (double-buffered).
                pl.BlockSpec((tb, in_dim), lambda i: (i, 0)),
                # Weights / biases: same block every step -> VMEM-resident.
                pl.BlockSpec((in_dim, hidden), lambda i: (0, 0)),
                pl.BlockSpec((1, hidden), lambda i: (0, 0)),
                pl.BlockSpec((hidden, hidden), lambda i: (0, 0)),
                pl.BlockSpec((1, hidden), lambda i: (0, 0)),
                pl.BlockSpec((hidden, out_pad), lambda i: (0, 0)),
                pl.BlockSpec((1, out_pad), lambda i: (0, 0)),
            ],
            out_specs=pl.BlockSpec((tb, out_pad), lambda i: (i, 0)),
        ),
        compiler_params=pltpu.CompilerParams(
            dimension_semantics=("parallel",),
        ),
    )(x_c, w1_c, b1_2d, w2_c, b2_2d, w3_c, b3_2d)

    # Strip batch padding and the lane padding of the output.
    return out_padded[:b, :out_dim]


def init_params(key, input_shape, output_shape, hidden_size):
    """Deterministic synthetic init (shapes match the torch module)."""
    k1, k2, k3, k4, k5, k6 = jax.random.split(key, 6)

    def lin(kw, kb, fan_in, fan_out):
        # torch.nn.Linear default: U(-1/sqrt(fan_in), 1/sqrt(fan_in))
        bound = 1.0 / jnp.sqrt(fan_in)
        w = jax.random.uniform(kw, (fan_in, fan_out), jnp.float32, -bound, bound)
        b = jax.random.uniform(kb, (fan_out,), jnp.float32, -bound, bound)
        return w, b

    w1, b1 = lin(k1, k2, input_shape, hidden_size)
    w2, b2 = lin(k3, k4, hidden_size, hidden_size)
    w3, b3 = lin(k5, k6, hidden_size, output_shape)
    return {"w1": w1, "b1": b1, "w2": w2, "b2": b2, "w3": w3, "b3": b3}


def _reference(x, params):
    x = x.reshape(x.shape[0], -1)
    h = jnp.maximum(x @ params["w1"] + params["b1"], 0.0)
    h = jnp.maximum(h @ params["w2"] + params["b2"], 0.0)
    return h @ params["w3"] + params["b3"]


if __name__ == "__main__":
    # onedof env implies tiny observation / action spaces.
    input_shape = 4     # np.prod(env.observation_space.shape)
    output_shape = 2    # np.prod(env.action_space.shape)
    hidden_size = 32

    key = jax.random.PRNGKey(0)
    kx, kp, kx2 = jax.random.split(key, 3)
    params = init_params(kp, input_shape, output_shape, hidden_size)

    # Case 1: amortized batch of states (non-multiple of the tile, exercises
    # batch padding + grid), strict f32 check against the pure-JAX reference.
    batch = 1000
    x = jax.random.normal(kx, (batch, input_shape), jnp.float32)
    out = jax.block_until_ready(mlp_forward(x, params))
    ref = _reference(x, params)
    assert out.shape == (batch, output_shape)
    assert jnp.allclose(out, ref, atol=1e-5, rtol=1e-5)

    # Case 2: tiny batch, bf16 MXU inputs (v6e/v7x path), looser tolerance.
    batch_small = 8
    x2 = jax.random.normal(kx2, (batch_small, input_shape), jnp.float32)
    out_bf16 = jax.block_until_ready(
        mlp_forward(x2, params, compute_dtype=jnp.bfloat16))
    ref2 = _reference(x2, params)
    assert out_bf16.shape == (batch_small, output_shape)
    assert jnp.allclose(out_bf16, ref2, atol=3e-2, rtol=3e-2)

    print("KERNEL_OK")
</pallas_src>

<mosaic_0001>
module attributes {stable_mosaic.version = 11 : i64} {
  func.func @_mlp_kernel(%arg0: i32, %arg1: memref<512x4xf32, #tpu.memory_space<vmem>>, %arg2: memref<4x32xf32, #tpu.memory_space<vmem>>, %arg3: memref<1x32xf32, #tpu.memory_space<vmem>>, %arg4: memref<32x32xf32, #tpu.memory_space<vmem>>, %arg5: memref<1x32xf32, #tpu.memory_space<vmem>>, %arg6: memref<32x128xf32, #tpu.memory_space<vmem>>, %arg7: memref<1x128xf32, #tpu.memory_space<vmem>>, %arg8: memref<512x128xf32, #tpu.memory_space<vmem>>) attributes {dimension_semantics = [#tpu.dimension_semantics<parallel>], iteration_bounds = array<i64: 2>, scalar_prefetch = 0 : i64, scratch_operands = 0 : i64, tpu.core_type = #tpu.core_type<tc>, window_params = [{transform_indices = @transform_0, window_bounds = array<i64: 512, 4>}, {pipeline_mode = #tpu.pipeline_mode<synchronous>, transform_indices = @transform_1, window_bounds = array<i64: 4, 32>}, {pipeline_mode = #tpu.pipeline_mode<synchronous>, transform_indices = @transform_2, window_bounds = array<i64: 1, 32>}, {pipeline_mode = #tpu.pipeline_mode<synchronous>, transform_indices = @transform_3, window_bounds = array<i64: 32, 32>}, {pipeline_mode = #tpu.pipeline_mode<synchronous>, transform_indices = @transform_4, window_bounds = array<i64: 1, 32>}, {pipeline_mode = #tpu.pipeline_mode<synchronous>, transform_indices = @transform_5, window_bounds = array<i64: 32, 128>}, {pipeline_mode = #tpu.pipeline_mode<synchronous>, transform_indices = @transform_6, window_bounds = array<i64: 1, 128>}, {transform_indices = @transform_7, window_bounds = array<i64: 512, 128>}]} {
    %c0 = arith.constant 0 : index
    %c0_0 = arith.constant 0 : index
    %0 = vector.load %arg1[%c0, %c0_0] : memref<512x4xf32, #tpu.memory_space<vmem>>, vector<512x4xf32>
    %c0_1 = arith.constant 0 : index
    %c0_2 = arith.constant 0 : index
    %1 = vector.load %arg2[%c0_1, %c0_2] : memref<4x32xf32, #tpu.memory_space<vmem>>, vector<4x32xf32>
    %cst = arith.constant dense<0.000000e+00> : vector<512x32xf32>
    %2 = tpu.matmul %0, %1, %cst {dimension_numbers = #tpu.dot_dimension_numbers<[1], [0], [0], [1], [0, 0, 1, 1], [], []>} : vector<512x4xf32>, vector<4x32xf32>, vector<512x32xf32> -> vector<512x32xf32>
    %c0_3 = arith.constant 0 : index
    %c0_4 = arith.constant 0 : index
    %3 = vector.load %arg3[%c0_3, %c0_4] : memref<1x32xf32, #tpu.memory_space<vmem>>, vector<1x32xf32>
    %4 = vector.broadcast %3 : vector<1x32xf32> to vector<512x32xf32>
    %5 = arith.addf %2, %4 : vector<512x32xf32>
    %cst_5 = arith.constant 0.000000e+00 : f32
    %6 = vector.broadcast %cst_5 : f32 to vector<512x32xf32>
    %7 = arith.maximumf %5, %6 : vector<512x32xf32>
    %c0_6 = arith.constant 0 : index
    %c0_7 = arith.constant 0 : index
    %8 = vector.load %arg4[%c0_6, %c0_7] : memref<32x32xf32, #tpu.memory_space<vmem>>, vector<32x32xf32>
    %cst_8 = arith.constant dense<0.000000e+00> : vector<512x32xf32>
    %9 = tpu.matmul %7, %8, %cst_8 {dimension_numbers = #tpu.dot_dimension_numbers<[1], [0], [0], [1], [0, 0, 1, 1], [], []>} : vector<512x32xf32>, vector<32x32xf32>, vector<512x32xf32> -> vector<512x32xf32>
    %c0_9 = arith.constant 0 : index
    %c0_10 = arith.constant 0 : index
    %10 = vector.load %arg5[%c0_9, %c0_10] : memref<1x32xf32, #tpu.memory_space<vmem>>, vector<1x32xf32>
    %11 = vector.broadcast %10 : vector<1x32xf32> to vector<512x32xf32>
    %12 = arith.addf %9, %11 : vector<512x32xf32>
    %cst_11 = arith.constant 0.000000e+00 : f32
    %13 = vector.broadcast %cst_11 : f32 to vector<512x32xf32>
    %14 = arith.maximumf %12, %13 : vector<512x32xf32>
    %c0_12 = arith.constant 0 : index
    %c0_13 = arith.constant 0 : index
    %15 = vector.load %arg6[%c0_12, %c0_13] : memref<32x128xf32, #tpu.memory_space<vmem>>, vector<32x128xf32>
    %cst_14 = arith.constant dense<0.000000e+00> : vector<512x128xf32>
    %16 = tpu.matmul %14, %15, %cst_14 {dimension_numbers = #tpu.dot_dimension_numbers<[1], [0], [0], [1], [0, 0, 1, 1], [], []>} : vector<512x32xf32>, vector<32x128xf32>, vector<512x128xf32> -> vector<512x128xf32>
    %c0_15 = arith.constant 0 : index
    %c0_16 = arith.constant 0 : index
    %17 = vector.load %arg7[%c0_15, %c0_16] : memref<1x128xf32, #tpu.memory_space<vmem>>, vector<1x128xf32>
    %18 = vector.broadcast %17 : vector<1x128xf32> to vector<512x128xf32>
    %19 = arith.addf %16, %18 : vector<512x128xf32>
    %c0_17 = arith.constant 0 : index
    %c0_18 = arith.constant 0 : index
    %20 = vector.load %arg8[%c0_17, %c0_18] : memref<512x128xf32, #tpu.memory_space<vmem>>, vector<512x128xf32>
    tpu.vector_store %arg8[%c0_17, %c0_18], %19 {strides = array<i32>} : memref<512x128xf32, #tpu.memory_space<vmem>>, vector<512x128xf32>,
    return
  }
  func.func @transform_0(%arg0: i32) -> (i32, i32) {
    %c0_i32 = arith.constant 0 : i32
    %c0_i32_0 = arith.constant 0 : i32
    return %arg0, %c0_i32 : i32, i32
  }
  func.func @transform_1(%arg0: i32) -> (i32, i32) {
    %c0_i32 = arith.constant 0 : i32
    %c0_i32_0 = arith.constant 0 : i32
    %c0_i32_1 = arith.constant 0 : i32
    return %c0_i32, %c0_i32_0 : i32, i32
  }
  func.func @transform_2(%arg0: i32) -> (i32, i32) {
    %c0_i32 = arith.constant 0 : i32
    %c0_i32_0 = arith.constant 0 : i32
    %c0_i32_1 = arith.constant 0 : i32
    return %c0_i32, %c0_i32_0 : i32, i32
  }
  func.func @transform_3(%arg0: i32) -> (i32, i32) {
    %c0_i32 = arith.constant 0 : i32
    %c0_i32_0 = arith.constant 0 : i32
    %c0_i32_1 = arith.constant 0 : i32
    return %c0_i32, %c0_i32_0 : i32, i32
  }
  func.func @transform_4(%arg0: i32) -> (i32, i32) {
    %c0_i32 = arith.constant 0 : i32
    %c0_i32_0 = arith.constant 0 : i32
    %c0_i32_1 = arith.constant 0 : i32
    return %c0_i32, %c0_i32_0 : i32, i32
  }
  func.func @transform_5(%arg0: i32) -> (i32, i32) {
    %c0_i32 = arith.constant 0 : i32
    %c0_i32_0 = arith.constant 0 : i32
    %c0_i32_1 = arith.constant 0 : i32
    return %c0_i32, %c0_i32_0 : i32, i32
  }
  func.func @transform_6(%arg0: i32) -> (i32, i32) {
    %c0_i32 = arith.constant 0 : i32
    %c0_i32_0 = arith.constant 0 : i32
    %c0_i32_1 = arith.constant 0 : i32
    return %c0_i32, %c0_i32_0 : i32, i32
  }
  func.func @transform_7(%arg0: i32) -> (i32, i32) {
    %c0_i32 = arith.constant 0 : i32
    %c0_i32_0 = arith.constant 0 : i32
    return %arg0, %c0_i32 : i32, i32
  }
}

</mosaic_0001>

<bundles_post_ra>
// kernel: tpu_custom_call.1
= control target key start
LH: loop header
LB: loop body
LE: loop exit
PB: predicated region body
PF: predicated region fallthrough
CT: control target
= control target key end

     0   :  { %12 = vsyncpa [#allocation3], 0  ;;  %s2883_s0 = inlined_call_operand.vmem [shape: f32[1024,4], index: 0, kind: input, shape index: {}]   ;;  %s2884_s1 = inlined_call_operand.vmem [shape: f32[4,32], index: 1, kind: input, shape index: {}]   ;;  %s2885_s2 = inlined_call_operand.vmem [shape: f32[1,32], index: 2, kind: input, shape index: {}]   ;;  %s2886_s3 = inlined_call_operand.vmem [shape: f32[32,32], index: 3, kind: input, shape index: {}]   ;;  %s2887_s4 = inlined_call_operand.vmem [shape: f32[1,32], index: 4, kind: input, shape index: {}]   ;;  %s2888_s5 = inlined_call_operand.vmem [shape: f32[32,128], index: 5, kind: input, shape index: {}]   ;;  %s2889_s6 = inlined_call_operand.vmem [shape: f32[1,128], index: 6, kind: input, shape index: {}]   ;;  %s2890_s7 = inlined_call_operand.hbm [shape: f32[1024,128], index: 7, kind: output, shape index: {}]  }
   0x1   :  { %14 = vsyncpa [#allocation3 + $0x1], 0  ;;  %s2212_s24 = smov 0   ;;  %s2214_s25 = smov 0  }
   0x2   :  { %s2216_s26 = smov 0   ;;  %s2218_s27 = smov 0  }
   0x3 LB: > { %s2233_s28 = sadd.s32 4294967295, %s2168_s27   ;;  %s1844_s29 = sadd.s32 4294967294, %s2168_s27   ;;  %s2168_s27 = sphi %s2218_s27, %s2896_s27   ;;  %s2164_s26 = sphi %s2216_s26, %s2895_s26   ;;  %s2160_s25 = sphi %s2214_s25, %s2894_s25   ;;  %s2156_s24 = sphi %s2212_s24, %s2893_s24  }
   0x4   : > { %s2237_s30 = sadd.s32 1, %s2168_s27   ;;  %s179_s8 = sadd.s32 1, %s2164_s26 }
   0x5   : > { %s176_s9 = ssub.s32 %s2168_s27, %s2237_s30  ;;  %p189_p0 = scmp.ne.s32.totalorder %s2164_s26, %s2160_s25 }
   0x6   : > { %p177_p1 = scmp.eq.s32.totalorder %s176_s9, 0  ;;  %p190_p2 = scmp.eq.s32.totalorder %s2233_s28, 1 }
   0x7   : > { %p195_p3 = scmp.ne.s32.totalorder %s2160_s25, %s2156_s24  ;;  %p196_p4 = scmp.eq.s32.totalorder %s1844_s29, 1 }
   0x8   : > { %s2248_s10 = scalar_select %p177_p1, %s2164_s26, %s179_s8  }
   0x9   : > { %p2250_p5 = por %p190_p2, %p189_p0  ;;  %p2254_p6 = por %p196_p4, %p195_p3 }
   0xa   : > { %p1847_p7 = scmp.ge.s32.totalorder %s2168_s27, 1  ;;  %p241_p8 = scmp.lt.s32.totalorder %s2168_s27, 3 }
   0xc   : > { %p242_p9 = pnand %p1847_p7, %p241_p8 }
   0xd   : > { %s1849_s15 = sshll.u32 (!%p242_p9), %s2233_s28, 6  ;;  %s270_s13 = sand.u32 (!%p242_p9), 1, %s2160_s25  }
   0xe   : > { %245 = sbr.rel (%p242_p9) target bundleno = 931 (0x3a3), region = 48  ;;  %p274_p10 = scmp.lt.s32.totalorder (!%p242_p9), %s1849_s15, 127 }
   0xf   : > { %s1848_s14 = sshll.u32 (!%p242_p9), %s270_s13, 9  ;;  %s2049_s29 = sshll.u32 (!%p242_p9), %s2233_s28, 9 }
  0x10   : > { %s2539_s17 = scalar_lea.vmem (!%p242_p9), [#allocation2], %s1848_s14  ;;  %s1778_s14 = scalar_lea.hbm (!%p242_p9), %s2890_s7, %s2049_s29 }
  0x11   : > { %s2126_s22 = scalar_lea.hbm (!%p242_p9), %s2890_s7, 1024 }
  0x13   : > { %v344_v0 = vld [vmem:[%s2884_s1] sm:$0xf]  ;;  %vm542_vm0 = vcmask 1043456   ;;  %s2898_s15 = smov (!%p274_p10, %s1849_s15), 127  ;;  %vm349_vm1 = vcmask 31744   ;;  %v822_v13 = vld [vmem:[%s2886_s3 + $0x18] sm:$0xff] }
  0x14   : > { %1851 = vmatpush.msk.msra.mxu0 %vm542_vm0, %v344_v0  ;;  %2050 = vmatpush.msk.msra.mxu3 %vm542_vm0, %v344_v0  ;;  %s1850_s16 = sshll.u32 %s2898_s15, 3  ;;  %v821_v14 = vld [vmem:[%s2886_s3 + $0x10] sm:$0xff]  ;;  %v820_v16 = vld [vmem:[%s2886_s3 + $0x8] sm:$0xff]  ;;  %v819_v17 = vld [vmem:[%s2886_s3] sm:$0xff]  ;;  %vm827_vm2 = vcmask 261120   ;;  %s1779_s15 = sshll.u32 %s2539_s17, 4  ;;  %s1780_s15 = int_to_ptr.vmem [resolvable:$true] %s1779_s15 }
  0x15   : > { %s2267_s19 = scalar_lea.vmem %s2883_s0, %s1850_s16  ;;  %1032 = vmatpush.msra.mxu1 %v822_v13  ;;  %v2316_v21 = vld [vmem:[%s2885_s2] ss:$0 sm:$0xff]  ;;  %s1781_s16 = sshll.u32 %s1778_s14, 4  ;;  %s1782_s16 = int_to_ptr.hbm [resolvable:$true] %s1781_s16 }
  0x16   : > { %v280_v1 = vld [vmem:[%s2267_s19] sm:$0xff]  ;;  %v281_v2 = vld [vmem:[%s2267_s19 + $0x8] sm:$0xff]  ;;  %v282_v3 = vld [vmem:[%s2267_s19 + $0x10] sm:$0xff]  ;;  %2051 = vmatpush.msrb.mxu3 %v822_v13  ;;  %s2120_s18 = sshra.s32 %s1782_s16, 4  ;;  %s2121_s18 = int_to_ptr.hbm [resolvable:$true] %s2120_s18 }
  0x17   : > { %1852 = vmatmul.msk.f32.vlgmr.msra.gmra.mxu0 %vm349_vm1, %v280_v1  ;;  %v283_v4 = vld [vmem:[%s2267_s19 + $0x18] sm:$0xff]  ;;  %v284_v5 = vld [vmem:[%s2267_s19 + $0x20] sm:$0xff]  ;;  %v285_v6 = vld [vmem:[%s2267_s19 + $0x28] sm:$0xff]  ;;  %1033 = vmatpush.msra.mxu1 %v821_v14  ;;  %s2122_s28 = scalar_lea.hbm %s2121_s18, 512  ;;  %p2127_p0 = scmp.lt.s32.totalorder %s2121_s18, %s2890_s7 }
  0x18   : > { %v286_v7 = vld [vmem:[%s2267_s19 + $0x30] sm:$0xff]  ;;  %v287_v8 = vld [vmem:[%s2267_s19 + $0x38] sm:$0xff]  ;;  %v288_v9 = vld [vmem:[%s2267_s19 + $0x40] sm:$0xff]  ;;  %2052 = vmatpush.msrb.mxu3 %v821_v14  ;;  %p2123_p11 = scmp.ne.s32.totalorder %s2121_s18, %s2122_s28  ;;  %p2128_p1 = scmp.lt.s32.totalorder %s2126_s22, %s2122_s28 }
  0x19   : > { %v289_v10 = vld [vmem:[%s2267_s19 + $0x48] sm:$0xff]  ;;  %v290_v11 = vld [vmem:[%s2267_s19 + $0x50] sm:$0xff]  ;;  %v291_v12 = vld [vmem:[%s2267_s19 + $0x58] sm:$0xff]  ;;  %1034 = vmatpush.msra.mxu1 %v820_v16 }
  0x1a   : > { %v292_v15 = vld [vmem:[%s2267_s19 + $0x60] sm:$0xff]  ;;  %2053 = vmatpush.msrb.mxu3 %v820_v16  ;;  %v293_v18 = vld [vmem:[%s2267_s19 + $0x68] sm:$0xff]  ;;  %v294_v19 = vld [vmem:[%s2267_s19 + $0x70] sm:$0xff]  ;;  %p2124_p12 = pnand %p2123_p11, %p2250_p5  ;;  %p2129_p2 = por %p2128_p1, %p2127_p0 }
  0x1b   : > { %1035 = vmatpush.msra.mxu1 %v819_v17  ;;  %v295_v20 = vld [vmem:[%s2267_s19 + $0x78] sm:$0xff]  ;;  %v296_v23 = vld [vmem:[%s2267_s19 + $0x80] sm:$0xff]  ;;  %v297_v27 = vld [vmem:[%s2267_s19 + $0x88] sm:$0xff] }
  0x1c   : > { %2054 = vmatpush.msrb.mxu3 %v819_v17  ;;  %v298_v31 = vld [vmem:[%s2267_s19 + $0x90] sm:$0xff]  ;;  %v299_v35 = vld [vmem:[%s2267_s19 + $0x98] sm:$0xff]  ;;  %v300_v39 = vld [vmem:[%s2267_s19 + $0xa0] sm:$0xff]  ;;  %p2125_p13 = pneg %p2124_p12 }
  0x1d   : > { %v301_v43 = vld [vmem:[%s2267_s19 + $0xa8] sm:$0xff]  ;;  %v302_v47 = vld [vmem:[%s2267_s19 + $0xb0] sm:$0xff]  ;;  %v303_v51 = vld [vmem:[%s2267_s19 + $0xb8] sm:$0xff] }
  0x1e   : > { %v304_v55 = vld [vmem:[%s2267_s19 + $0xc0] sm:$0xff]  ;;  %v305_v59 = vld [vmem:[%s2267_s19 + $0xc8] sm:$0xff]  ;;  %v306_v63 = vld [vmem:[%s2267_s19 + $0xd0] sm:$0xff]  ;;  %p2130_p3 = pnand %p2129_p2, %p2125_p13 }
  0x1f   : > { %1853 = vmatmul.msk.f32.gmra.mxu0 %vm349_vm1, %v281_v2  ;;  %v2391_v13 = vld [vmem:[%s2888_s5] sm:$0xff] }
  0x27   : > { %1854 = vmatmul.msk.f32.gmra.mxu0 %vm349_vm1, %v282_v3  ;;  %v307_v3 = vld [vmem:[%s2267_s19 + $0xd8] sm:$0xff] }
  0x2f   : > { %1855 = vmatmul.msk.f32.gmra.mxu0 %vm349_vm1, %v283_v4 }
  0x37   : > { %1856 = vmatmul.msk.f32.gmra.mxu0 %vm349_vm1, %v284_v5 }
  0x3f   : > { %1857 = vmatmul.msk.f32.gmra.mxu0 %vm349_vm1, %v285_v6  ;;  %v2369_v6 = vld [vmem:[%s2888_s5 + $0x18] sm:$0xff] }
  0x40   : > { %1505 = vmatpush.msra.mxu2 %v2369_v6 }
  0x47   : > { %1858 = vmatmul.msk.f32.gmra.mxu0 %vm349_vm1, %v286_v7 }
  0x4f   : > { %1859 = vmatmul.msk.f32.gmra.mxu0 %vm349_vm1, %v287_v8  ;;  %v308_v8 = vld [vmem:[%s2267_s19 + $0xe0] sm:$0xff] }
  0x57   : > { %1860 = vmatmul.msk.f32.gmra.mxu0 %vm349_vm1, %v288_v9 }
  0x5f   : > { %1861 = vmatmul.msk.f32.gmra.mxu0 %vm349_vm1, %v289_v10  ;;  %v2377_v10 = vld [vmem:[%s2888_s5 + $0x10] sm:$0xff] }
  0x60   : > { %1506 = vmatpush.msra.mxu2 %v2377_v10 }
  0x67   : > { %1862 = vmatmul.msk.f32.gmra.mxu0 %vm349_vm1, %v290_v11 }
  0x6f   : > { %1863 = vmatmul.msk.f32.gmra.mxu0 %vm349_vm1, %v291_v12  ;;  %v2384_v12 = vld [vmem:[%s2888_s5 + $0x8] sm:$0xff] }
  0x70   : > { %1507 = vmatpush.msra.mxu2 %v2384_v12 }
  0x72   : > { %1508 = vmatpush.msra.mxu2 %v2391_v13 }
  0x77   : > { %1864 = vmatmul.msk.f32.gmra.mxu0 %vm349_vm1, %v292_v15  ;;  %v309_v15 = vld [vmem:[%s2267_s19 + $0xe8] sm:$0xff] }
  0x7f   : > { %1865 = vmatmul.msk.f32.gmra.mxu0 %vm349_vm1, %v293_v18 }
  0x87   : > { %1866 = vmatmul.msk.f32.gmra.mxu0 %vm349_vm1, %v294_v19  ;;  %v310_v19 = vld [vmem:[%s2267_s19 + $0xf0] sm:$0xff] }
  0x8f   : > { %1867 = vmatmul.msk.f32.gmra.mxu0 %vm349_vm1, %v295_v20 }
  0x94   : > { %v563_v22 = vpop.f32.mrf.mxu0 }
  0x95   : > { %v564_v24 = vadd.f32 %v2316_v21, %v563_v22 }
  0x97   : > { %v755_v25 = vmax.f32 %v564_v24, 0.0  ;;  %1868 = vmatmul.msk.f32.gmra.mxu0 %vm349_vm1, %v296_v23  ;;  %v311_v24 = vld [vmem:[%s2267_s19 + $0xf8] sm:$0xff] }
  0x99   : > { %1916 = vmatmul.msk.f32.vlgmr.msra.gmra.mxu1 %vm827_vm2, %v755_v25 }
  0x9c   : > { %v566_v26 = vpop.f32.mrf.mxu0 }
  0x9d   : > { %v567_v28 = vadd.f32 %v2316_v21, %v566_v26 }
  0x9f   : > { %v756_v29 = vmax.f32 %v567_v28, 0.0  ;;  %1869 = vmatmul.msk.f32.gmra.mxu0 %vm349_vm1, %v297_v27  ;;  %v2409_v27 = vld [vmem:[%s2887_s4] ss:$0 sm:$0xff] }
  0xa1   : > { %1917 = vmatmul.msk.f32.gmra.mxu1 %vm827_vm2, %v756_v29  ;;  %v312_v29 = vld [vmem:[%s2267_s19 + $0x100] sm:$0xff] }
  0xa4   : > { %v569_v30 = vpop.f32.mrf.mxu0 }
  0xa5   : > { %v570_v32 = vadd.f32 %v2316_v21, %v569_v30 }
  0xa7   : > { %v757_v33 = vmax.f32 %v570_v32, 0.0  ;;  %1870 = vmatmul.msk.f32.gmra.mxu0 %vm349_vm1, %v298_v31 }
  0xa9   : > { %1918 = vmatmul.msk.f32.gmra.mxu1 %vm827_vm2, %v757_v33 }
  0xac   : > { %v572_v34 = vpop.f32.mrf.mxu0 }
  0xad   : > { %v573_v36 = vadd.f32 %v2316_v21, %v572_v34 }
  0xaf   : > { %v758_v37 = vmax.f32 %v573_v36, 0.0  ;;  %1871 = vmatmul.msk.f32.gmra.mxu0 %vm349_vm1, %v299_v35  ;;  %v313_v36 = vld [vmem:[%s2267_s19 + $0x108] sm:$0xff] }
  0xb1   : > { %1919 = vmatmul.msk.f32.gmra.mxu1 %vm827_vm2, %v758_v37 }
  0xb4   : > { %v575_v38 = vpop.f32.mrf.mxu0 }
  0xb5   : > { %v576_v40 = vadd.f32 %v2316_v21, %v575_v38 }
  0xb7   : > { %v759_v41 = vmax.f32 %v576_v40, 0.0  ;;  %1872 = vmatmul.msk.f32.gmra.mxu0 %vm349_vm1, %v300_v39 }
  0xb9   : > { %1920 = vmatmul.msk.f32.gmra.mxu1 %vm827_vm2, %v759_v41 }
  0xbc   : > { %v578_v42 = vpop.f32.mrf.mxu0 }
  0xbd   : > { %v579_v44 = vadd.f32 %v2316_v21, %v578_v42 }
  0xbf   : > { %v760_v45 = vmax.f32 %v579_v44, 0.0  ;;  %1873 = vmatmul.msk.f32.gmra.mxu0 %vm349_vm1, %v301_v43  ;;  %v314_v43 = vld [vmem:[%s2267_s19 + $0x110] sm:$0xff] }
  0xc1   : > { %1921 = vmatmul.msk.f32.gmra.mxu1 %vm827_vm2, %v760_v45 }
  0xc4   : > { %v581_v46 = vpop.f32.mrf.mxu0 }
  0xc5   : > { %v582_v48 = vadd.f32 %v2316_v21, %v581_v46 }
  0xc7   : > { %v761_v49 = vmax.f32 %v582_v48, 0.0  ;;  %1874 = vmatmul.msk.f32.gmra.mxu0 %vm349_vm1, %v302_v47 }
  0xc9   : > { %1922 = vmatmul.msk.f32.gmra.mxu1 %vm827_vm2, %v761_v49 }
  0xcc   : > { %v584_v50 = vpop.f32.mrf.mxu0 }
  0xcd   : > { %v585_v52 = vadd.f32 %v2316_v21, %v584_v50  ;;  %v315_v50 = vld [vmem:[%s2267_s19 + $0x118] sm:$0xff] }
  0xcf   : > { %v762_v53 = vmax.f32 %v585_v52, 0.0  ;;  %1875 = vmatmul.msk.f32.gmra.mxu0 %vm349_vm1, %v303_v51 }
  0xd1   : > { %1923 = vmatmul.msk.f32.gmra.mxu1 %vm827_vm2, %v762_v53 }
  0xd4   : > { %v587_v54 = vpop.f32.mrf.mxu0 }
  0xd5   : > { %v588_v56 = vadd.f32 %v2316_v21, %v587_v54 }
  0xd7   : > { %v763_v57 = vmax.f32 %v588_v56, 0.0  ;;  %1876 = vmatmul.msk.f32.gmra.mxu0 %vm349_vm1, %v304_v55 }
  0xd9   : > { %1924 = vmatmul.msk.f32.gmra.mxu1 %vm827_vm2, %v763_v57  ;;  %v316_v57 = vld [vmem:[%s2267_s19 + $0x120] sm:$0xff] }
  0xdc   : > { %v590_v58 = vpop.f32.mrf.mxu0 }
  0xdd   : > { %v591_v60 = vadd.f32 %v2316_v21, %v590_v58 }
  0xdf   : > { %v764_v61 = vmax.f32 %v591_v60, 0.0  ;;  %1877 = vmatmul.msk.f32.gmra.mxu0 %vm349_vm1, %v305_v59 }
  0xe1   : > { %1925 = vmatmul.msk.f32.gmra.mxu1 %vm827_vm2, %v764_v61 }
  0xe4   : > { %v593_v62 = vpop.f32.mrf.mxu0 }
  0xe5   : > { %v594_v0 = vadd.f32 %v2316_v21, %v593_v62 }
  0xe7   : > { %v765_v1 = vmax.f32 %v594_v0, 0.0  ;;  %1878 = vmatmul.msk.f32.gmra.mxu0 %vm349_vm1, %v306_v63  ;;  %v317_v0 = vld [vmem:[%s2267_s19 + $0x128] sm:$0xff] }
  0xe9   : > { %1926 = vmatmul.msk.f32.gmra.mxu1 %vm827_vm2, %v765_v1 }
  0xec   : > { %v596_v2 = vpop.f32.mrf.mxu0 }
  0xed   : > { %v597_v4 = vadd.f32 %v2316_v21, %v596_v2 }
  0xef   : > { %v766_v5 = vmax.f32 %v597_v4, 0.0  ;;  %1879 = vmatmul.msk.f32.gmra.mxu0 %vm349_vm1, %v307_v3 }
  0xf1   : > { %1927 = vmatmul.msk.f32.gmra.mxu1 %vm827_vm2, %v766_v5 }
  0xf4   : > { %v599_v7 = vpop.f32.mrf.mxu0 }
  0xf5   : > { %v600_v9 = vadd.f32 %v2316_v21, %v599_v7 }
  0xf7   : > { %v767_v11 = vmax.f32 %v600_v9, 0.0  ;;  %1880 = vmatmul.msk.f32.gmra.mxu0 %vm349_vm1, %v308_v8  ;;  %v318_v8 = vld [vmem:[%s2267_s19 + $0x130] sm:$0xff] }
  0xf9   : > { %1928 = vmatmul.msk.f32.gmra.mxu1 %vm827_vm2, %v767_v11 }
  0xfc   : > { %v602_v14 = vpop.f32.mrf.mxu0 }
  0xfd   : > { %v603_v16 = vadd.f32 %v2316_v21, %v602_v14 }
  0xff   : > { %v768_v17 = vmax.f32 %v603_v16, 0.0  ;;  %1881 = vmatmul.msk.f32.gmra.mxu0 %vm349_vm1, %v309_v15 }
 0x101   : > { %1929 = vmatmul.msk.f32.gmra.mxu1 %vm827_vm2, %v768_v17 }
 0x104   : > { %v605_v18 = vpop.f32.mrf.mxu0 }
 0x105   : > { %v606_v20 = vadd.f32 %v2316_v21, %v605_v18  ;;  %v319_v18 = vld [vmem:[%s2267_s19 + $0x138] sm:$0xff] }
 0x107   : > { %v769_v22 = vmax.f32 %v606_v20, 0.0  ;;  %1882 = vmatmul.msk.f32.gmra.mxu0 %vm349_vm1, %v310_v19 }
 0x109   : > { %1930 = vmatmul.msk.f32.gmra.mxu1 %vm827_vm2, %v769_v22 }
 0x10c   : > { %v608_v23 = vpop.f32.mrf.mxu0 }
 0x10d   : > { %v609_v25 = vadd.f32 %v2316_v21, %v608_v23 }
 0x10f   : > { %v770_v26 = vmax.f32 %v609_v25, 0.0  ;;  %1883 = vmatmul.msk.f32.gmra.mxu0 %vm349_vm1, %v311_v24 }
 0x111   : > { %1931 = vmatmul.msk.f32.gmra.mxu1 %vm827_vm2, %v770_v26  ;;  %v320_v26 = vld [vmem:[%s2267_s19 + $0x140] sm:$0xff] }
 0x114   : > { %v611_v28 = vpop.f32.mrf.mxu0 }
 0x115   : > { %v612_v30 = vadd.f32 %v2316_v21, %v611_v28 }
 0x116   : > { %v1037_v31 = vpop.f32.mrf.mxu1 }
 0x117   : > { %v771_v32 = vmax.f32 %v612_v30, 0.0  ;;  %v1038_v33 = vadd.f32 %v2409_v27, %v1037_v31  ;;  %1884 = vmatmul.msk.f32.gmra.mxu0 %vm349_vm1, %v312_v29 }
 0x119   : > { %v1229_v34 = vmax.f32 %v1038_v33, 0.0  ;;  %1932 = vmatmul.msk.f32.gmra.mxu1 %vm827_vm2, %v771_v32 }
 0x11b   : > { %1980 = vmatmul.msk.f32.vlgmr.msra.gmra.mxu2 %vm827_vm2, %v1229_v34  ;;  %v321_v34 = vld [vmem:[%s2267_s19 + $0x148] sm:$0xff] }
 0x11c   : > { %v614_v35 = vpop.f32.mrf.mxu0 }
 0x11d   : > { %v615_v37 = vadd.f32 %v2316_v21, %v614_v35 }
 0x11e   : > { %v1040_v38 = vpop.f32.mrf.mxu1 }
 0x11f   : > { %v772_v39 = vmax.f32 %v615_v37, 0.0  ;;  %v1041_v40 = vadd.f32 %v2409_v27, %v1040_v38  ;;  %1885 = vmatmul.msk.f32.gmra.mxu0 %vm349_vm1, %v313_v36 }
 0x121   : > { %v1230_v41 = vmax.f32 %v1041_v40, 0.0  ;;  %1933 = vmatmul.msk.f32.gmra.mxu1 %vm827_vm2, %v772_v39 }
 0x123   : > { %1981 = vmatmul.msk.f32.gmra.mxu2 %vm827_vm2, %v1230_v41  ;;  %v322_v41 = vld [vmem:[%s2267_s19 + $0x150] sm:$0xff] }
 0x124   : > { %v617_v42 = vpop.f32.mrf.mxu0 }
 0x125   : > { %v618_v44 = vadd.f32 %v2316_v21, %v617_v42 }
 0x126   : > { %v1043_v45 = vpop.f32.mrf.mxu1 }
 0x127   : > { %v773_v46 = vmax.f32 %v618_v44, 0.0  ;;  %v1044_v47 = vadd.f32 %v2409_v27, %v1043_v45  ;;  %1886 = vmatmul.msk.f32.gmra.mxu0 %vm349_vm1, %v314_v43 }
 0x129   : > { %v1231_v48 = vmax.f32 %v1044_v47, 0.0  ;;  %1934 = vmatmul.msk.f32.gmra.mxu1 %vm827_vm2, %v773_v46 }
 0x12b   : > { %1982 = vmatmul.msk.f32.gmra.mxu2 %vm827_vm2, %v1231_v48  ;;  %v323_v48 = vld [vmem:[%s2267_s19 + $0x158] sm:$0xff] }
 0x12c   : > { %v620_v49 = vpop.f32.mrf.mxu0 }
 0x12d   : > { %v621_v51 = vadd.f32 %v2316_v21, %v620_v49 }
 0x12e   : > { %v1046_v52 = vpop.f32.mrf.mxu1 }
 0x12f   : > { %v774_v53 = vmax.f32 %v621_v51, 0.0  ;;  %v1047_v54 = vadd.f32 %v2409_v27, %v1046_v52  ;;  %1887 = vmatmul.msk.f32.gmra.mxu0 %vm349_vm1, %v315_v50 }
 0x131   : > { %v1232_v55 = vmax.f32 %v1047_v54, 0.0  ;;  %1935 = vmatmul.msk.f32.gmra.mxu1 %vm827_vm2, %v774_v53 }
 0x133   : > { %1983 = vmatmul.msk.f32.gmra.mxu2 %vm827_vm2, %v1232_v55  ;;  %v324_v55 = vld [vmem:[%s2267_s19 + $0x160] sm:$0xff] }
 0x134   : > { %v623_v56 = vpop.f32.mrf.mxu0 }
 0x135   : > { %v624_v58 = vadd.f32 %v2316_v21, %v623_v56 }
 0x136   : > { %v1049_v59 = vpop.f32.mrf.mxu1 }
 0x137   : > { %v775_v60 = vmax.f32 %v624_v58, 0.0  ;;  %v1050_v61 = vadd.f32 %v2409_v27, %v1049_v59  ;;  %1888 = vmatmul.msk.f32.gmra.mxu0 %vm349_vm1, %v316_v57 }
 0x139   : > { %v1233_v62 = vmax.f32 %v1050_v61, 0.0  ;;  %1936 = vmatmul.msk.f32.gmra.mxu1 %vm827_vm2, %v775_v60  ;;  %v329_v60 = vld [vmem:[%s2267_s19 + $0x188] sm:$0xff] }
 0x13a   : > { %1901 = vmatmul.msk.f32.vlgmr.msra.gmra.mxu3 %vm349_vm1, %v329_v60 }
 0x13b   : > { %1984 = vmatmul.msk.f32.gmra.mxu2 %vm827_vm2, %v1233_v62  ;;  %2055 = vmatpush.msra.mxu3 %v2369_v6 }
 0x13c   : > { %v626_v63 = vpop.f32.mrf.mxu0 }
 0x13d   : > { %v627_v1 = vadd.f32 %v2316_v21, %v626_v63  ;;  %v325_v63 = vld [vmem:[%s2267_s19 + $0x168] sm:$0xff]  ;;  %2056 = vmatpush.msra.mxu3 %v2377_v10 }
 0x13e   : > { %v1052_v2 = vpop.f32.mrf.mxu1 }
 0x13f   : > { %v776_v3 = vmax.f32 %v627_v1, 0.0  ;;  %v1053_v4 = vadd.f32 %v2409_v27, %v1052_v2  ;;  %1889 = vmatmul.msk.f32.gmra.mxu0 %vm349_vm1, %v317_v0  ;;  %2057 = vmatpush.msra.mxu3 %v2384_v12 }
 0x141   : > { %v1234_v5 = vmax.f32 %v1053_v4, 0.0  ;;  %1937 = vmatmul.msk.f32.gmra.mxu1 %vm827_vm2, %v776_v3  ;;  %v330_v4 = vld [vmem:[%s2267_s19 + $0x190] sm:$0xff]  ;;  %2058 = vmatpush.msra.mxu3 %v2391_v13  ;;  %v331_v13 = vld [vmem:[%s2267_s19 + $0x198] sm:$0xff] }
 0x142   : > { %1902 = vmatmul.msk.f32.gmra.mxu3 %vm349_vm1, %v330_v4 }
 0x143   : > { %1985 = vmatmul.msk.f32.gmra.mxu2 %vm827_vm2, %v1234_v5  ;;  %v326_v5 = vld [vmem:[%s2267_s19 + $0x170] sm:$0xff] }
 0x144   : > { %v629_v7 = vpop.f32.mrf.mxu0 }
 0x145   : > { %v630_v9 = vadd.f32 %v2316_v21, %v629_v7 }
 0x146   : > { %v1055_v11 = vpop.f32.mrf.mxu1 }
 0x147   : > { %v777_v14 = vmax.f32 %v630_v9, 0.0  ;;  %v1056_v15 = vadd.f32 %v2409_v27, %v1055_v11  ;;  %1890 = vmatmul.msk.f32.gmra.mxu0 %vm349_vm1, %v318_v8 }
 0x149   : > { %v1235_v16 = vmax.f32 %v1056_v15, 0.0  ;;  %1938 = vmatmul.msk.f32.gmra.mxu1 %vm827_vm2, %v777_v14  ;;  %v327_v15 = vld [vmem:[%s2267_s19 + $0x178] sm:$0xff] }
 0x14a   : > { %1903 = vmatmul.msk.f32.gmra.mxu3 %vm349_vm1, %v331_v13  ;;  %v338_v13 = vld [vmem:[%s2267_s19 + $0x1d0] sm:$0xff] }
 0x14b   : > { %1986 = vmatmul.msk.f32.gmra.mxu2 %vm827_vm2, %v1235_v16 }
 0x14c   : > { %v632_v17 = vpop.f32.mrf.mxu0 }
 0x14d   : > { %v633_v19 = vadd.f32 %v2316_v21, %v632_v17 }
 0x14e   : > { %v1058_v20 = vpop.f32.mrf.mxu1 }
 0x14f   : > { %v778_v22 = vmax.f32 %v633_v19, 0.0  ;;  %v1059_v23 = vadd.f32 %v2409_v27, %v1058_v20  ;;  %1891 = vmatmul.msk.f32.gmra.mxu0 %vm349_vm1, %v319_v18  ;;  %v332_v20 = vld [vmem:[%s2267_s19 + $0x1a0] sm:$0xff] }
 0x151   : > { %v1236_v24 = vmax.f32 %v1059_v23, 0.0  ;;  %1939 = vmatmul.msk.f32.gmra.mxu1 %vm827_vm2, %v778_v22 }
 0x152   : > { %1904 = vmatmul.msk.f32.gmra.mxu3 %vm349_vm1, %v332_v20 }
 0x153   : > { %1987 = vmatmul.msk.f32.gmra.mxu2 %vm827_vm2, %v1236_v24  ;;  %v328_v24 = vld [vmem:[%s2267_s19 + $0x180] sm:$0xff] }
 0x154   : > { %v635_v25 = vpop.f32.mrf.mxu0 }
 0x155   : > { %v636_v28 = vadd.f32 %v2316_v21, %v635_v25 }
 0x156   : > { %v1061_v29 = vpop.f32.mrf.mxu1 }
 0x157   : > { %v779_v30 = vmax.f32 %v636_v28, 0.0  ;;  %v1062_v31 = vadd.f32 %v2409_v27, %v1061_v29  ;;  %1892 = vmatmul.msk.f32.gmra.mxu0 %vm349_vm1, %v320_v26 }
 0x159   : > { %v1237_v32 = vmax.f32 %v1062_v31, 0.0  ;;  %1940 = vmatmul.msk.f32.gmra.mxu1 %vm827_vm2, %v779_v30  ;;  %v333_v30 = vld [vmem:[%s2267_s19 + $0x1a8] sm:$0xff] }
 0x15a   : > { %1905 = vmatmul.msk.f32.gmra.mxu3 %vm349_vm1, %v333_v30 }
 0x15b   : > { %1988 = vmatmul.msk.f32.gmra.mxu2 %vm827_vm2, %v1237_v32  ;;  %v2533_v32 = vld [vmem:[%s2889_s6] ss:$0 sm:$0xff] }
 0x15c   : > { %v638_v33 = vpop.f32.mrf.mxu0 }
 0x15d   : > { %v639_v35 = vadd.f32 %v2316_v21, %v638_v33 }
 0x15e   : > { %v1064_v36 = vpop.f32.mrf.mxu1 }
 0x15f   : > { %v780_v37 = vmax.f32 %v639_v35, 0.0  ;;  %v1065_v38 = vadd.f32 %v2409_v27, %v1064_v36  ;;  %1893 = vmatmul.msk.f32.gmra.mxu0 %vm349_vm1, %v321_v34 }
 0x161   : > { %v1238_v39 = vmax.f32 %v1065_v38, 0.0  ;;  %1941 = vmatmul.msk.f32.gmra.mxu1 %vm827_vm2, %v780_v37 }
 0x163   : > { %1989 = vmatmul.msk.f32.gmra.mxu2 %vm827_vm2, %v1238_v39 }
 0x164   : > { %v641_v40 = vpop.f32.mrf.mxu0 }
 0x165   : > { %v642_v42 = vadd.f32 %v2316_v21, %v641_v40  ;;  %v334_v40 = vld [vmem:[%s2267_s19 + $0x1b0] sm:$0xff] }
 0x166   : > { %v1067_v43 = vpop.f32.mrf.mxu1  ;;  %1906 = vmatmul.msk.f32.gmra.mxu3 %vm349_vm1, %v334_v40 }
 0x167   : > { %v781_v44 = vmax.f32 %v642_v42, 0.0  ;;  %v1068_v45 = vadd.f32 %v2409_v27, %v1067_v43  ;;  %1894 = vmatmul.msk.f32.gmra.mxu0 %vm349_vm1, %v322_v41 }
 0x169   : > { %v1239_v46 = vmax.f32 %v1068_v45, 0.0  ;;  %1942 = vmatmul.msk.f32.gmra.mxu1 %vm827_vm2, %v781_v44 }
 0x16b   : > { %1990 = vmatmul.msk.f32.gmra.mxu2 %vm827_vm2, %v1239_v46 }
 0x16c   : > { %v644_v47 = vpop.f32.mrf.mxu0 }
 0x16d   : > { %v645_v49 = vadd.f32 %v2316_v21, %v644_v47 }
 0x16e   : > { %v1070_v50 = vpop.f32.mrf.mxu1 }
 0x16f   : > { %v782_v51 = vmax.f32 %v645_v49, 0.0  ;;  %v1071_v52 = vadd.f32 %v2409_v27, %v1070_v50  ;;  %1895 = vmatmul.msk.f32.gmra.mxu0 %vm349_vm1, %v323_v48  ;;  %v335_v49 = vld [vmem:[%s2267_s19 + $0x1b8] sm:$0xff] }
 0x170   : > { %1907 = vmatmul.msk.f32.gmra.mxu3 %vm349_vm1, %v335_v49 }
 0x171   : > { %v1240_v53 = vmax.f32 %v1071_v52, 0.0  ;;  %1943 = vmatmul.msk.f32.gmra.mxu1 %vm827_vm2, %v782_v51 }
 0x173   : > { %1991 = vmatmul.msk.f32.gmra.mxu2 %vm827_vm2, %v1240_v53 }
 0x174   : > { %v647_v54 = vpop.f32.mrf.mxu0 }
 0x175   : > { %v648_v56 = vadd.f32 %v2316_v21, %v647_v54 }
 0x176   : > { %v1073_v57 = vpop.f32.mrf.mxu1 }
 0x177   : > { %v783_v58 = vmax.f32 %v648_v56, 0.0  ;;  %v1074_v59 = vadd.f32 %v2409_v27, %v1073_v57  ;;  %1896 = vmatmul.msk.f32.gmra.mxu0 %vm349_vm1, %v324_v55 }
 0x179   : > { %v1241_v61 = vmax.f32 %v1074_v59, 0.0  ;;  %1944 = vmatmul.msk.f32.gmra.mxu1 %vm827_vm2, %v783_v58  ;;  %v336_v58 = vld [vmem:[%s2267_s19 + $0x1c0] sm:$0xff] }
 0x17a   : > { %1908 = vmatmul.msk.f32.gmra.mxu3 %vm349_vm1, %v336_v58 }
 0x17b   : > { %1992 = vmatmul.msk.f32.gmra.mxu2 %vm827_vm2, %v1241_v61 }
 0x17c   : > { %v650_v62 = vpop.f32.mrf.mxu0 }
 0x17d   : > { %v651_v0 = vadd.f32 %v2316_v21, %v650_v62 }
 0x17e   : > { %v1076_v1 = vpop.f32.mrf.mxu1 }
 0x17f   : > { %v784_v2 = vmax.f32 %v651_v0, 0.0  ;;  %v1077_v3 = vadd.f32 %v2409_v27, %v1076_v1  ;;  %1897 = vmatmul.msk.f32.gmra.mxu0 %vm349_vm1, %v325_v63 }
 0x181   : > { %v1242_v6 = vmax.f32 %v1077_v3, 0.0  ;;  %1945 = vmatmul.msk.f32.gmra.mxu1 %vm827_vm2, %v784_v2  ;;  %v337_v3 = vld [vmem:[%s2267_s19 + $0x1c8] sm:$0xff] }
 0x182   : > { %1909 = vmatmul.msk.f32.gmra.mxu3 %vm349_vm1, %v337_v3 }
 0x183   : > { %1993 = vmatmul.msk.f32.gmra.mxu2 %vm827_vm2, %v1242_v6 }
 0x184   : > { %v653_v10 = vpop.f32.mrf.mxu0 }
 0x185   : > { %v654_v12 = vadd.f32 %v2316_v21, %v653_v10 }
 0x186   : > { %v1079_v7 = vpop.f32.mrf.mxu1 }
 0x187   : > { %v785_v8 = vmax.f32 %v654_v12, 0.0  ;;  %v1080_v9 = vadd.f32 %v2409_v27, %v1079_v7  ;;  %1898 = vmatmul.msk.f32.gmra.mxu0 %vm349_vm1, %v326_v5 }
 0x189   : > { %v1243_v11 = vmax.f32 %v1080_v9, 0.0  ;;  %1946 = vmatmul.msk.f32.gmra.mxu1 %vm827_vm2, %v785_v8 }
 0x18a   : > { %1910 = vmatmul.msk.f32.gmra.mxu3 %vm349_vm1, %v338_v13 }
 0x18b   : > { %1994 = vmatmul.msk.f32.gmra.mxu2 %vm827_vm2, %v1243_v11 }
 0x18c   : > { %v656_v14 = vpop.f32.mrf.mxu0 }
 0x18d   : > { %v657_v16 = vadd.f32 %v2316_v21, %v656_v14 }
 0x18e   : > { %v1082_v17 = vpop.f32.mrf.mxu1 }
 0x18f   : > { %v786_v18 = vmax.f32 %v657_v16, 0.0  ;;  %v1083_v19 = vadd.f32 %v2409_v27, %v1082_v17  ;;  %1899 = vmatmul.msk.f32.gmra.mxu0 %vm349_vm1, %v327_v15 }
 0x191   : > { %v1244_v22 = vmax.f32 %v1083_v19, 0.0  ;;  %1947 = vmatmul.msk.f32.gmra.mxu1 %vm827_vm2, %v786_v18 }
 0x193   : > { %1995 = vmatmul.msk.f32.gmra.mxu2 %vm827_vm2, %v1244_v22  ;;  %v339_v22 = vld [vmem:[%s2267_s19 + $0x1d8] sm:$0xff] }
 0x194   : > { %v659_v23 = vpop.f32.mrf.mxu0  ;;  %1911 = vmatmul.msk.f32.gmra.mxu3 %vm349_vm1, %v339_v22 }
 0x195   : > { %v660_v25 = vadd.f32 %v2316_v21, %v659_v23 }
 0x196   : > { %v1085_v26 = vpop.f32.mrf.mxu1 }
 0x197   : > { %v787_v28 = vmax.f32 %v660_v25, 0.0  ;;  %v1086_v29 = vadd.f32 %v2409_v27, %v1085_v26  ;;  %1900 = vmatmul.msk.f32.gmra.mxu0 %vm349_vm1, %v328_v24 }
 0x199   : > { %v1245_v31 = vmax.f32 %v1086_v29, 0.0  ;;  %1948 = vmatmul.msk.f32.gmra.mxu1 %vm827_vm2, %v787_v28 }
 0x19b   : > { %1996 = vmatmul.msk.f32.gmra.mxu2 %vm827_vm2, %v1245_v31 }
 0x19c   : > { %v662_v33 = vpop.f32.mrf.mxu0 }
 0x19d   : > { %v663_v34 = vadd.f32 %v2316_v21, %v662_v33  ;;  %v340_v33 = vld [vmem:[%s2267_s19 + $0x1e0] sm:$0xff] }
 0x19e   : > { %v1088_v35 = vpop.f32.mrf.mxu1  ;;  %v1510_v36 = vpop.f32.mrf.mxu2  ;;  %1912 = vmatmul.msk.f32.gmra.mxu3 %vm349_vm1, %v340_v33 }
 0x19f   : > { %v788_v37 = vmax.f32 %v663_v34, 0.0  ;;  %v1089_v38 = vadd.f32 %v2409_v27, %v1088_v35  ;;  %v1511_v39 = vadd.f32 %v2533_v32, %v1510_v36 }
 0x1a1   : > { %v1246_v41 = vmax.f32 %v1089_v38, 0.0  ;;  %1702 = vst [vmem:[%s2539_s17] sm:$0xff] %v1511_v39  ;;  %1949 = vmatmul.msk.f32.gmra.mxu1 %vm827_vm2, %v788_v37 }
 0x1a3   : > { %1997 = vmatmul.msk.f32.gmra.mxu2 %vm827_vm2, %v1246_v41 }
 0x1a4   : > { %v665_v42 = vpop.f32.mrf.mxu0 }
 0x1a5   : > { %v666_v43 = vadd.f32 %v2316_v21, %v665_v42  ;;  %v341_v42 = vld [vmem:[%s2267_s19 + $0x1e8] sm:$0xff] }
 0x1a6   : > { %v1091_v44 = vpop.f32.mrf.mxu1  ;;  %v1513_v45 = vpop.f32.mrf.mxu2  ;;  %1913 = vmatmul.msk.f32.gmra.mxu3 %vm349_vm1, %v341_v42 }
 0x1a7   : > { %v789_v46 = vmax.f32 %v666_v43, 0.0  ;;  %v1092_v47 = vadd.f32 %v2409_v27, %v1091_v44  ;;  %v1514_v48 = vadd.f32 %v2533_v32, %v1513_v45 }
 0x1a9   : > { %v1247_v50 = vmax.f32 %v1092_v47, 0.0  ;;  %1703 = vst [vmem:[%s2539_s17 + $0x8] sm:$0xff] %v1514_v48  ;;  %1950 = vmatmul.msk.f32.gmra.mxu1 %vm827_vm2, %v789_v46 }
 0x1ab   : > { %1998 = vmatmul.msk.f32.gmra.mxu2 %vm827_vm2, %v1247_v50 }
 0x1ac   : > { %v668_v51 = vpop.f32.mrf.mxu0 }
 0x1ad   : > { %v669_v52 = vadd.f32 %v2316_v21, %v668_v51  ;;  %v342_v51 = vld [vmem:[%s2267_s19 + $0x1f0] sm:$0xff] }
 0x1ae   : > { %v1094_v53 = vpop.f32.mrf.mxu1  ;;  %v1516_v54 = vpop.f32.mrf.mxu2  ;;  %1914 = vmatmul.msk.f32.gmra.mxu3 %vm349_vm1, %v342_v51 }
 0x1af   : > { %v790_v55 = vmax.f32 %v669_v52, 0.0  ;;  %v1095_v56 = vadd.f32 %v2409_v27, %v1094_v53  ;;  %v1517_v57 = vadd.f32 %v2533_v32, %v1516_v54 }
 0x1b1   : > { %v1248_v59 = vmax.f32 %v1095_v56, 0.0  ;;  %1704 = vst [vmem:[%s2539_s17 + $0x10] sm:$0xff] %v1517_v57  ;;  %1951 = vmatmul.msk.f32.gmra.mxu1 %vm827_vm2, %v790_v55 }
 0x1b3   : > { %1999 = vmatmul.msk.f32.gmra.mxu2 %vm827_vm2, %v1248_v59 }
 0x1b4   : > { %v671_v60 = vpop.f32.mrf.mxu0 }
 0x1b5   : > { %v672_v61 = vadd.f32 %v2316_v21, %v671_v60  ;;  %v343_v60 = vld [vmem:[%s2267_s19 + $0x1f8] sm:$0xff]  ;;  %s1767_s19 = scalar_lea.sflag [#allocation3], %s270_s13 }
 0x1b6   : > { %v1097_v62 = vpop.f32.mrf.mxu1  ;;  %v1519_v63 = vpop.f32.mrf.mxu2  ;;  %1915 = vmatmul.msk.f32.gmra.mxu3 %vm349_vm1, %v343_v60 }
 0x1b7   : > { %v791_v0 = vmax.f32 %v672_v61, 0.0  ;;  %v1098_v1 = vadd.f32 %v2409_v27, %v1097_v62  ;;  %v1520_v2 = vadd.f32 %v2533_v32, %v1519_v63 }
 0x1b9   : > { %v1249_v4 = vmax.f32 %v1098_v1, 0.0  ;;  %1705 = vst [vmem:[%s2539_s17 + $0x18] sm:$0xff] %v1520_v2  ;;  %1952 = vmatmul.msk.f32.gmra.mxu1 %vm827_vm2, %v791_v0 }
 0x1bb   : > { %2000 = vmatmul.msk.f32.gmra.mxu2 %vm827_vm2, %v1249_v4 }
 0x1bc   : > { %v674_v6 = vpop.f32.mrf.mxu0 }
 0x1bd   : > { %v675_v10 = vadd.f32 %v2316_v21, %v674_v6 }
 0x1be   : > { %v1100_v5 = vpop.f32.mrf.mxu1  ;;  %v1522_v12 = vpop.f32.mrf.mxu2 }
 0x1bf   : > { %v792_v7 = vmax.f32 %v675_v10, 0.0  ;;  %v1101_v8 = vadd.f32 %v2409_v27, %v1100_v5  ;;  %v1523_v9 = vadd.f32 %v2533_v32, %v1522_v12 }
 0x1c1   : > { %v1250_v11 = vmax.f32 %v1101_v8, 0.0  ;;  %1706 = vst [vmem:[%s2539_s17 + $0x20] sm:$0xff] %v1523_v9  ;;  %1953 = vmatmul.msk.f32.gmra.mxu1 %vm827_vm2, %v792_v7 }
 0x1c3   : > { %2001 = vmatmul.msk.f32.gmra.mxu2 %vm827_vm2, %v1250_v11 }
 0x1c4   : > { %v677_v14 = vpop.f32.mrf.mxu0 }
 0x1c5   : > { %v678_v15 = vadd.f32 %v2316_v21, %v677_v14 }
 0x1c6   : > { %v1103_v16 = vpop.f32.mrf.mxu1  ;;  %v1525_v17 = vpop.f32.mrf.mxu2 }
 0x1c7   : > { %v793_v18 = vmax.f32 %v678_v15, 0.0  ;;  %v1104_v19 = vadd.f32 %v2409_v27, %v1103_v16  ;;  %v1526_v20 = vadd.f32 %v2533_v32, %v1525_v17  ;;  %v710_v15 = vpop.f32.mrf.mxu3 }
 0x1c9   : > { %v1251_v23 = vmax.f32 %v1104_v19, 0.0  ;;  %1707 = vst [vmem:[%s2539_s17 + $0x28] sm:$0xff] %v1526_v20  ;;  %1954 = vmatmul.msk.f32.gmra.mxu1 %vm827_vm2, %v793_v18 }
 0x1cb   : > { %2002 = vmatmul.msk.f32.gmra.mxu2 %vm827_vm2, %v1251_v23 }
 0x1cc   : > { %v680_v24 = vpop.f32.mrf.mxu0 }
 0x1cd   : > { %v681_v25 = vadd.f32 %v2316_v21, %v680_v24 }
 0x1ce   : > { %v1106_v26 = vpop.f32.mrf.mxu1  ;;  %v1528_v28 = vpop.f32.mrf.mxu2 }
 0x1cf   : > { %v794_v29 = vmax.f32 %v681_v25, 0.0  ;;  %v1107_v30 = vadd.f32 %v2409_v27, %v1106_v26  ;;  %v1529_v31 = vadd.f32 %v2533_v32, %v1528_v28  ;;  %v713_v25 = vpop.f32.mrf.mxu3 }
 0x1d0   : > { %v714_v60 = vadd.f32 %v2316_v21, %v713_v25 }
 0x1d1   : > { %v1252_v34 = vmax.f32 %v1107_v30, 0.0  ;;  %1708 = vst [vmem:[%s2539_s17 + $0x30] sm:$0xff] %v1529_v31  ;;  %1955 = vmatmul.msk.f32.gmra.mxu1 %vm827_vm2, %v794_v29 }
 0x1d3   : > { %2003 = vmatmul.msk.f32.gmra.mxu2 %vm827_vm2, %v1252_v34 }
 0x1d4   : > { %v683_v35 = vpop.f32.mrf.mxu0 }
 0x1d5   : > { %v684_v36 = vadd.f32 %v2316_v21, %v683_v35 }
 0x1d6   : > { %v1109_v37 = vpop.f32.mrf.mxu1  ;;  %v1531_v38 = vpop.f32.mrf.mxu2 }
 0x1d7   : > { %v795_v39 = vmax.f32 %v684_v36, 0.0  ;;  %v1110_v40 = vadd.f32 %v2409_v27, %v1109_v37  ;;  %v1532_v41 = vadd.f32 %v2533_v32, %v1531_v38  ;;  %v716_v37 = vpop.f32.mrf.mxu3 }
 0x1d9   : > { %v1253_v43 = vmax.f32 %v1110_v40, 0.0  ;;  %1709 = vst [vmem:[%s2539_s17 + $0x38] sm:$0xff] %v1532_v41  ;;  %1956 = vmatmul.msk.f32.gmra.mxu1 %vm827_vm2, %v795_v39 }
 0x1db   : > { %2004 = vmatmul.msk.f32.gmra.mxu2 %vm827_vm2, %v1253_v43 }
 0x1dc   : > { %v686_v44 = vpop.f32.mrf.mxu0 }
 0x1dd   : > { %v687_v45 = vadd.f32 %v2316_v21, %v686_v44 }
 0x1de   : > { %v1112_v46 = vpop.f32.mrf.mxu1  ;;  %v1534_v47 = vpop.f32.mrf.mxu2 }
 0x1df   : > { %v796_v48 = vmax.f32 %v687_v45, 0.0  ;;  %v1113_v49 = vadd.f32 %v2409_v27, %v1112_v46  ;;  %v1535_v50 = vadd.f32 %v2533_v32, %v1534_v47  ;;  %v719_v51 = vpop.f32.mrf.mxu3 }
 0x1e1   : > { %v1254_v52 = vmax.f32 %v1113_v49, 0.0  ;;  %1710 = vst [vmem:[%s2539_s17 + $0x40] sm:$0xff] %v1535_v50  ;;  %1957 = vmatmul.msk.f32.gmra.mxu1 %vm827_vm2, %v796_v48 }
 0x1e3   : > { %2005 = vmatmul.msk.f32.gmra.mxu2 %vm827_vm2, %v1254_v52 }
 0x1e4   : > { %v689_v53 = vpop.f32.mrf.mxu0 }
 0x1e5   : > { %v690_v54 = vadd.f32 %v2316_v21, %v689_v53  ;;  %v711_v53 = vadd.f32 %v2316_v21, %v710_v15 }
 0x1e6   : > { %v1115_v55 = vpop.f32.mrf.mxu1  ;;  %v1537_v56 = vpop.f32.mrf.mxu2 }
 0x1e7   : > { %v797_v57 = vmax.f32 %v690_v54, 0.0  ;;  %v1116_v58 = vadd.f32 %v2409_v27, %v1115_v55  ;;  %v1538_v59 = vadd.f32 %v2533_v32, %v1537_v56  ;;  %v804_v54 = vmax.f32 %v711_v53, 0.0 }
 0x1e9   : > { %v1255_v61 = vmax.f32 %v1116_v58, 0.0  ;;  %1711 = vst [vmem:[%s2539_s17 + $0x48] sm:$0xff] %v1538_v59  ;;  %1958 = vmatmul.msk.f32.gmra.mxu1 %vm827_vm2, %v797_v57 }
 0x1eb   : > { %2006 = vmatmul.msk.f32.gmra.mxu2 %vm827_vm2, %v1255_v61  ;;  %v722_v61 = vpop.f32.mrf.mxu3 }
 0x1ec   : > { %v692_v62 = vpop.f32.mrf.mxu0 }
 0x1ed   : > { %v693_v63 = vadd.f32 %v2316_v21, %v692_v62  ;;  %v805_v62 = vmax.f32 %v714_v60, 0.0 }
 0x1ee   : > { %v1118_v0 = vpop.f32.mrf.mxu1  ;;  %v1540_v1 = vpop.f32.mrf.mxu2 }
 0x1ef   : > { %v798_v2 = vmax.f32 %v693_v63, 0.0  ;;  %v1119_v3 = vadd.f32 %v2409_v27, %v1118_v0  ;;  %v1541_v4 = vadd.f32 %v2533_v32, %v1540_v1 }
 0x1f1   : > { %v1256_v6 = vmax.f32 %v1119_v3, 0.0  ;;  %1712 = vst [vmem:[%s2539_s17 + $0x50] sm:$0xff] %v1541_v4  ;;  %1959 = vmatmul.msk.f32.gmra.mxu1 %vm827_vm2, %v798_v2  ;;  %v2667_v4 = vld [vmem:[%s2885_s2] ss:$0 sm:$0xff] }
 0x1f3   : > { %2007 = vmatmul.msk.f32.gmra.mxu2 %vm827_vm2, %v1256_v6  ;;  %v725_v6 = vpop.f32.mrf.mxu3 }
 0x1f4   : > { %v695_v10 = vpop.f32.mrf.mxu0 }
 0x1f5   : > { %v696_v5 = vadd.f32 %v2316_v21, %v695_v10 }
 0x1f6   : > { %v1121_v12 = vpop.f32.mrf.mxu1  ;;  %v1543_v7 = vpop.f32.mrf.mxu2 }
 0x1f7   : > { %v799_v8 = vmax.f32 %v696_v5, 0.0  ;;  %v1122_v9 = vadd.f32 %v2409_v27, %v1121_v12  ;;  %v1544_v13 = vadd.f32 %v2533_v32, %v1543_v7 }
 0x1f9   : > { %v1257_v11 = vmax.f32 %v1122_v9, 0.0  ;;  %1713 = vst [vmem:[%s2539_s17 + $0x58] sm:$0xff] %v1544_v13  ;;  %1960 = vmatmul.msk.f32.gmra.mxu1 %vm827_vm2, %v799_v8  ;;  %v720_v13 = vadd.f32 %v2667_v4, %v719_v51 }
 0x1fb   : > { %2008 = vmatmul.msk.f32.gmra.mxu2 %vm827_vm2, %v1257_v11  ;;  %v807_v11 = vmax.f32 %v720_v13, 0.0 }
 0x1fc   : > { %v698_v14 = vpop.f32.mrf.mxu0 }
 0x1fd   : > { %v699_v16 = vadd.f32 %v2316_v21, %v698_v14  ;;  %v728_v14 = vpop.f32.mrf.mxu3 }
 0x1fe   : > { %v1124_v17 = vpop.f32.mrf.mxu1  ;;  %v1546_v18 = vpop.f32.mrf.mxu2 }
 0x1ff   : > { %v800_v19 = vmax.f32 %v699_v16, 0.0  ;;  %v1125_v20 = vadd.f32 %v2409_v27, %v1124_v17  ;;  %v1547_v22 = vadd.f32 %v2533_v32, %v1546_v18 }
 0x201   : > { %v1258_v23 = vmax.f32 %v1125_v20, 0.0  ;;  %1714 = vst [vmem:[%s2539_s17 + $0x60] sm:$0xff] %v1547_v22  ;;  %1961 = vmatmul.msk.f32.gmra.mxu1 %vm827_vm2, %v800_v19  ;;  %v723_v20 = vadd.f32 %v2667_v4, %v722_v61 }
 0x203   : > { %2009 = vmatmul.msk.f32.gmra.mxu2 %vm827_vm2, %v1258_v23  ;;  %v808_v22 = vmax.f32 %v723_v20, 0.0 }
 0x204   : > { %v701_v24 = vpop.f32.mrf.mxu0 }
 0x205   : > { %v702_v26 = vadd.f32 %v2316_v21, %v701_v24 }
 0x206   : > { %v1127_v28 = vpop.f32.mrf.mxu1  ;;  %v1549_v29 = vpop.f32.mrf.mxu2 }
 0x207   : > { %v801_v30 = vmax.f32 %v702_v26, 0.0  ;;  %v1128_v31 = vadd.f32 %v2409_v27, %v1127_v28  ;;  %v1550_v33 = vadd.f32 %v2533_v32, %v1549_v29  ;;  %v731_v28 = vpop.f32.mrf.mxu3 }
 0x209   : > { %v1259_v34 = vmax.f32 %v1128_v31, 0.0  ;;  %1715 = vst [vmem:[%s2539_s17 + $0x68] sm:$0xff] %v1550_v33  ;;  %1962 = vmatmul.msk.f32.gmra.mxu1 %vm827_vm2, %v801_v30  ;;  %v726_v30 = vadd.f32 %v2667_v4, %v725_v6 }
 0x20b   : > { %2010 = vmatmul.msk.f32.gmra.mxu2 %vm827_vm2, %v1259_v34  ;;  %v809_v31 = vmax.f32 %v726_v30, 0.0 }
 0x20c   : > { %v704_v35 = vpop.f32.mrf.mxu0 }
 0x20d   : > { %v705_v36 = vadd.f32 %v2316_v21, %v704_v35 }
 0x20e   : > { %v1130_v38 = vpop.f32.mrf.mxu1  ;;  %v1552_v39 = vpop.f32.mrf.mxu2 }
 0x20f   : > { %v802_v40 = vmax.f32 %v705_v36, 0.0  ;;  %v1131_v41 = vadd.f32 %v2409_v27, %v1130_v38  ;;  %v1553_v42 = vadd.f32 %v2533_v32, %v1552_v39  ;;  %v729_v38 = vadd.f32 %v2667_v4, %v728_v14  ;;  %v734_v39 = vpop.f32.mrf.mxu3 }
 0x211   : > { %v1260_v43 = vmax.f32 %v1131_v41, 0.0  ;;  %1716 = vst [vmem:[%s2539_s17 + $0x70] sm:$0xff] %v1553_v42  ;;  %1963 = vmatmul.msk.f32.gmra.mxu1 %vm827_vm2, %v802_v40  ;;  %v810_v40 = vmax.f32 %v729_v38, 0.0 }
 0x213   : > { %2011 = vmatmul.msk.f32.gmra.mxu2 %vm827_vm2, %v1260_v43 }
 0x214   : > { %v707_v44 = vpop.f32.mrf.mxu0 }
 0x215   : > { %v708_v45 = vadd.f32 %v2316_v21, %v707_v44  ;;  %v717_v21 = vadd.f32 %v2667_v4, %v716_v37 }
 0x216   : > { %v1133_v46 = vpop.f32.mrf.mxu1  ;;  %v1555_v47 = vpop.f32.mrf.mxu2 }
 0x217   : > { %v803_v48 = vmax.f32 %v708_v45, 0.0  ;;  %v1134_v49 = vadd.f32 %v2409_v27, %v1133_v46  ;;  %v1556_v50 = vadd.f32 %v2533_v32, %v1555_v47  ;;  %v806_v10 = vmax.f32 %v717_v21, 0.0  ;;  %v737_v47 = vpop.f32.mrf.mxu3 }
 0x218   : > { %v732_v46 = vadd.f32 %v2667_v4, %v731_v28 }
 0x219   : > { %v1261_v52 = vmax.f32 %v1134_v49, 0.0  ;;  %1717 = vst [vmem:[%s2539_s17 + $0x78] sm:$0xff] %v1556_v50  ;;  %1964 = vmatmul.msk.f32.vlgmr.msrb.gmra.mxu3 %vm827_vm2, %v803_v48 }
 0x21a   : > { %v811_v48 = vmax.f32 %v732_v46, 0.0 }
 0x21b   : > { %2012 = vmatmul.msk.f32.gmra.mxu2 %vm827_vm2, %v1261_v52 }
 0x21e   : > { %v1136_v55 = vpop.f32.mrf.mxu1  ;;  %v1558_v56 = vpop.f32.mrf.mxu2 }
 0x21f   : > { %v1137_v57 = vadd.f32 %v2409_v27, %v1136_v55  ;;  %v1559_v58 = vadd.f32 %v2533_v32, %v1558_v56  ;;  %v740_v56 = vpop.f32.mrf.mxu3 }
 0x221   : > { %v1262_v59 = vmax.f32 %v1137_v57, 0.0  ;;  %1718 = vst [vmem:[%s2539_s17 + $0x80] sm:$0xff] %v1559_v58  ;;  %1965 = vmatmul.msk.f32.gmra.mxu3 %vm827_vm2, %v804_v54  ;;  %v735_v54 = vadd.f32 %v2667_v4, %v734_v39 }
 0x223   : > { %2013 = vmatmul.msk.f32.gmra.mxu2 %vm827_vm2, %v1262_v59  ;;  %v812_v55 = vmax.f32 %v735_v54, 0.0 }
 0x226   : > { %v1139_v63 = vpop.f32.mrf.mxu1  ;;  %v1561_v0 = vpop.f32.mrf.mxu2 }
 0x227   : > { %v1140_v1 = vadd.f32 %v2409_v27, %v1139_v63  ;;  %v1562_v2 = vadd.f32 %v2533_v32, %v1561_v0  ;;  %v743_v21 = vpop.f32.mrf.mxu3 }
 0x229   : > { %v1263_v3 = vmax.f32 %v1140_v1, 0.0  ;;  %1719 = vst [vmem:[%s2539_s17 + $0x88] sm:$0xff] %v1562_v2  ;;  %1966 = vmatmul.msk.f32.gmra.mxu3 %vm827_vm2, %v805_v62  ;;  %v738_v62 = vadd.f32 %v2667_v4, %v737_v47 }
 0x22b   : > { %2014 = vmatmul.msk.f32.gmra.mxu2 %vm827_vm2, %v1263_v3  ;;  %v813_v63 = vmax.f32 %v738_v62, 0.0 }
 0x22e   : > { %v1142_v5 = vpop.f32.mrf.mxu1  ;;  %v1564_v12 = vpop.f32.mrf.mxu2 }
 0x22f   : > { %v1143_v7 = vadd.f32 %v2409_v27, %v1142_v5  ;;  %v1565_v8 = vadd.f32 %v2533_v32, %v1564_v12  ;;  %v746_v14 = vpop.f32.mrf.mxu3 }
 0x231   : > { %v1264_v9 = vmax.f32 %v1143_v7, 0.0  ;;  %1720 = vst [vmem:[%s2539_s17 + $0x90] sm:$0xff] %v1565_v8  ;;  %1967 = vmatmul.msk.f32.gmra.mxu3 %vm827_vm2, %v806_v10  ;;  %v741_v10 = vadd.f32 %v2667_v4, %v740_v56 }
 0x233   : > { %2015 = vmatmul.msk.f32.gmra.mxu2 %vm827_vm2, %v1264_v9  ;;  %v814_v5 = vmax.f32 %v741_v10, 0.0 }
 0x236   : > { %v1145_v15 = vpop.f32.mrf.mxu1  ;;  %v1567_v16 = vpop.f32.mrf.mxu2 }
 0x237   : > { %v1146_v17 = vadd.f32 %v2409_v27, %v1145_v15  ;;  %v1568_v18 = vadd.f32 %v2533_v32, %v1567_v16 }
 0x239   : > { %v1265_v19 = vmax.f32 %v1146_v17, 0.0  ;;  %1721 = vst [vmem:[%s2539_s17 + $0x98] sm:$0xff] %v1568_v18  ;;  %1968 = vmatmul.msk.f32.gmra.mxu3 %vm827_vm2, %v807_v11  ;;  %v744_v11 = vadd.f32 %v2667_v4, %v743_v21  ;;  %v2728_v18 = vld [vmem:[%s2887_s4] ss:$0 sm:$0xff] }
 0x23b   : > { %2016 = vmatmul.msk.f32.gmra.mxu2 %vm827_vm2, %v1265_v19  ;;  %v815_v15 = vmax.f32 %v744_v11, 0.0 }
 0x23e   : > { %v1148_v23 = vpop.f32.mrf.mxu1  ;;  %v1570_v24 = vpop.f32.mrf.mxu2 }
 0x23f   : > { %v1149_v25 = vadd.f32 %v2409_v27, %v1148_v23  ;;  %v1571_v26 = vadd.f32 %v2533_v32, %v1570_v24  ;;  %v749_v23 = vpop.f32.mrf.mxu3 }
 0x241   : > { %v1266_v29 = vmax.f32 %v1149_v25, 0.0  ;;  %1722 = vst [vmem:[%s2539_s17 + $0xa0] sm:$0xff] %v1571_v26  ;;  %1969 = vmatmul.msk.f32.gmra.mxu3 %vm827_vm2, %v808_v22  ;;  %v747_v22 = vadd.f32 %v2667_v4, %v746_v14 }
 0x243   : > { %2017 = vmatmul.msk.f32.gmra.mxu2 %vm827_vm2, %v1266_v29  ;;  %v816_v24 = vmax.f32 %v747_v22, 0.0 }
 0x246   : > { %v1151_v33 = vpop.f32.mrf.mxu1  ;;  %v1573_v34 = vpop.f32.mrf.mxu2 }
 0x247   : > { %v1152_v35 = vadd.f32 %v2409_v27, %v1151_v33  ;;  %v1574_v36 = vadd.f32 %v2533_v32, %v1573_v34  ;;  %v752_v34 = vpop.f32.mrf.mxu3 }
 0x249   : > { %v1267_v37 = vmax.f32 %v1152_v35, 0.0  ;;  %1723 = vst [vmem:[%s2539_s17 + $0xa8] sm:$0xff] %v1574_v36  ;;  %1970 = vmatmul.msk.f32.gmra.mxu3 %vm827_vm2, %v809_v31  ;;  %v750_v31 = vadd.f32 %v2667_v4, %v749_v23 }
 0x24b   : > { %2018 = vmatmul.msk.f32.gmra.mxu2 %vm827_vm2, %v1267_v37  ;;  %v817_v33 = vmax.f32 %v750_v31, 0.0 }
 0x24e   : > { %v1154_v41 = vpop.f32.mrf.mxu1  ;;  %v1576_v42 = vpop.f32.mrf.mxu2 }
 0x24f   : > { %v1155_v43 = vadd.f32 %v2409_v27, %v1154_v41  ;;  %v1577_v44 = vadd.f32 %v2533_v32, %v1576_v42 }
 0x251   : > { %v1268_v45 = vmax.f32 %v1155_v43, 0.0  ;;  %1724 = vst [vmem:[%s2539_s17 + $0xb0] sm:$0xff] %v1577_v44  ;;  %1971 = vmatmul.msk.f32.gmra.mxu3 %vm827_vm2, %v810_v40  ;;  %v753_v40 = vadd.f32 %v2667_v4, %v752_v34 }
 0x253   : > { %2019 = vmatmul.msk.f32.gmra.mxu2 %vm827_vm2, %v1268_v45  ;;  %v818_v41 = vmax.f32 %v753_v40, 0.0 }
 0x256   : > { %v1157_v49 = vpop.f32.mrf.mxu1  ;;  %v1579_v50 = vpop.f32.mrf.mxu2 }
 0x257   : > { %v1158_v51 = vadd.f32 %v2409_v27, %v1157_v49  ;;  %v1580_v52 = vadd.f32 %v2533_v32, %v1579_v50 }
 0x259   : > { %v1269_v53 = vmax.f32 %v1158_v51, 0.0  ;;  %1725 = vst [vmem:[%s2539_s17 + $0xb8] sm:$0xff] %v1580_v52  ;;  %1972 = vmatmul.msk.f32.gmra.mxu3 %vm827_vm2, %v811_v48 }
 0x25b   : > { %2020 = vmatmul.msk.f32.gmra.mxu2 %vm827_vm2, %v1269_v53 }
 0x25e   : > { %v1160_v57 = vpop.f32.mrf.mxu1  ;;  %v1582_v58 = vpop.f32.mrf.mxu2 }
 0x25f   : > { %v1161_v59 = vadd.f32 %v2409_v27, %v1160_v57  ;;  %v1583_v60 = vadd.f32 %v2533_v32, %v1582_v58 }
 0x261   : > { %v1270_v61 = vmax.f32 %v1161_v59, 0.0  ;;  %1726 = vst [vmem:[%s2539_s17 + $0xc0] sm:$0xff] %v1583_v60  ;;  %1973 = vmatmul.msk.f32.gmra.mxu3 %vm827_vm2, %v812_v55 }
 0x263   : > { %2021 = vmatmul.msk.f32.gmra.mxu2 %vm827_vm2, %v1270_v61 }
 0x266   : > { %v1163_v0 = vpop.f32.mrf.mxu1  ;;  %v1585_v1 = vpop.f32.mrf.mxu2 }
 0x267   : > { %v1164_v2 = vadd.f32 %v2409_v27, %v1163_v0  ;;  %v1586_v3 = vadd.f32 %v2533_v32, %v1585_v1 }
 0x269   : > { %v1271_v6 = vmax.f32 %v1164_v2, 0.0  ;;  %1727 = vst [vmem:[%s2539_s17 + $0xc8] sm:$0xff] %v1586_v3  ;;  %1974 = vmatmul.msk.f32.gmra.mxu3 %vm827_vm2, %v813_v63 }
 0x26b   : > { %2022 = vmatmul.msk.f32.gmra.mxu2 %vm827_vm2, %v1271_v6 }
 0x26e   : > { %v1166_v12 = vpop.f32.mrf.mxu1  ;;  %v1588_v7 = vpop.f32.mrf.mxu2 }
 0x26f   : > { %v1167_v8 = vadd.f32 %v2409_v27, %v1166_v12  ;;  %v1589_v9 = vadd.f32 %v2533_v32, %v1588_v7 }
 0x271   : > { %v1272_v13 = vmax.f32 %v1167_v8, 0.0  ;;  %1728 = vst [vmem:[%s2539_s17 + $0xd0] sm:$0xff] %v1589_v9  ;;  %1975 = vmatmul.msk.f32.gmra.mxu3 %vm827_vm2, %v814_v5 }
 0x273   : > { %2023 = vmatmul.msk.f32.gmra.mxu2 %vm827_vm2, %v1272_v13 }
 0x276   : > { %v1169_v16 = vpop.f32.mrf.mxu1  ;;  %v1591_v17 = vpop.f32.mrf.mxu2 }
 0x277   : > { %v1170_v27 = vadd.f32 %v2728_v18, %v1169_v16  ;;  %v1592_v19 = vadd.f32 %v2533_v32, %v1591_v17 }
 0x279   : > { %v1273_v20 = vmax.f32 %v1170_v27, 0.0  ;;  %1729 = vst [vmem:[%s2539_s17 + $0xd8] sm:$0xff] %v1592_v19  ;;  %1976 = vmatmul.msk.f32.gmra.mxu3 %vm827_vm2, %v815_v15 }
 0x27b   : > { %2024 = vmatmul.msk.f32.gmra.mxu2 %vm827_vm2, %v1273_v20 }
 0x27e   : > { %v1172_v25 = vpop.f32.mrf.mxu1  ;;  %v1594_v26 = vpop.f32.mrf.mxu2 }
 0x27f   : > { %v1173_v28 = vadd.f32 %v2728_v18, %v1172_v25  ;;  %v1595_v29 = vadd.f32 %v2533_v32, %v1594_v26 }
 0x281   : > { %v1274_v30 = vmax.f32 %v1173_v28, 0.0  ;;  %1730 = vst [vmem:[%s2539_s17 + $0xe0] sm:$0xff] %v1595_v29  ;;  %1977 = vmatmul.msk.f32.gmra.mxu3 %vm827_vm2, %v816_v24 }
 0x283   : > { %2025 = vmatmul.msk.f32.gmra.mxu2 %vm827_vm2, %v1274_v30 }
 0x286   : > { %v1175_v35 = vpop.f32.mrf.mxu1  ;;  %v1597_v36 = vpop.f32.mrf.mxu2 }
 0x287   : > { %v1176_v37 = vadd.f32 %v2728_v18, %v1175_v35  ;;  %v1598_v38 = vadd.f32 %v2533_v32, %v1597_v36 }
 0x289   : > { %v1275_v39 = vmax.f32 %v1176_v37, 0.0  ;;  %1731 = vst [vmem:[%s2539_s17 + $0xe8] sm:$0xff] %v1598_v38  ;;  %1978 = vmatmul.msk.f32.gmra.mxu3 %vm827_vm2, %v817_v33 }
 0x28b   : > { %2026 = vmatmul.msk.f32.gmra.mxu2 %vm827_vm2, %v1275_v39 }
 0x28e   : > { %v1178_v42 = vpop.f32.mrf.mxu1  ;;  %v1600_v43 = vpop.f32.mrf.mxu2 }
 0x28f   : > { %v1179_v44 = vadd.f32 %v2728_v18, %v1178_v42  ;;  %v1601_v45 = vadd.f32 %v2533_v32, %v1600_v43 }
 0x291   : > { %v1276_v46 = vmax.f32 %v1179_v44, 0.0  ;;  %1732 = vst [vmem:[%s2539_s17 + $0xf0] sm:$0xff] %v1601_v45  ;;  %1979 = vmatmul.msk.f32.gmra.mxu3 %vm827_vm2, %v818_v41 }
 0x293   : > { %2027 = vmatmul.msk.f32.gmra.mxu2 %vm827_vm2, %v1276_v46 }
 0x296   : > { %v1603_v47 = vpop.f32.mrf.mxu2 }
 0x297   : > { %v1604_v4 = vadd.f32 %v2533_v32, %v1603_v47 }
 0x299   : > { %1733 = vst [vmem:[%s2539_s17 + $0xf8] sm:$0xff] %v1604_v4 }
 0x29c   : > { %v1181_v48 = vpop.f32.mrf.mxu3 }
 0x29d   : > { %v1182_v49 = vadd.f32 %v2728_v18, %v1181_v48 }
 0x29e   : > { %v1606_v50 = vpop.f32.mrf.mxu2 }
 0x29f   : > { %v1277_v51 = vmax.f32 %v1182_v49, 0.0  ;;  %v1607_v52 = vadd.f32 %v2533_v32, %v1606_v50 }
 0x2a1   : > { %1734 = vst [vmem:[%s2539_s17 + $0x100] sm:$0xff] %v1607_v52  ;;  %2028 = vmatmul.msk.f32.vlgmr.msra.gmra.mxu3 %vm827_vm2, %v1277_v51 }
 0x2a4   : > { %v1184_v53 = vpop.f32.mrf.mxu3 }
 0x2a5   : > { %v1185_v54 = vadd.f32 %v2728_v18, %v1184_v53 }
 0x2a6   : > { %v1609_v55 = vpop.f32.mrf.mxu2 }
 0x2a7   : > { %v1278_v56 = vmax.f32 %v1185_v54, 0.0  ;;  %v1610_v57 = vadd.f32 %v2533_v32, %v1609_v55 }
 0x2a9   : > { %1735 = vst [vmem:[%s2539_s17 + $0x108] sm:$0xff] %v1610_v57  ;;  %2029 = vmatmul.msk.f32.gmra.mxu3 %vm827_vm2, %v1278_v56 }
 0x2ac   : > { %v1187_v58 = vpop.f32.mrf.mxu3 }
 0x2ad   : > { %v1188_v59 = vadd.f32 %v2728_v18, %v1187_v58 }
 0x2ae   : > { %v1612_v60 = vpop.f32.mrf.mxu2 }
 0x2af   : > { %v1279_v61 = vmax.f32 %v1188_v59, 0.0  ;;  %v1613_v62 = vadd.f32 %v2533_v32, %v1612_v60 }
 0x2b1   : > { %1736 = vst [vmem:[%s2539_s17 + $0x110] sm:$0xff] %v1613_v62  ;;  %2030 = vmatmul.msk.f32.gmra.mxu3 %vm827_vm2, %v1279_v61 }
 0x2b4   : > { %v1190_v63 = vpop.f32.mrf.mxu3 }
 0x2b5   : > { %v1191_v0 = vadd.f32 %v2728_v18, %v1190_v63 }
 0x2b6   : > { %v1615_v1 = vpop.f32.mrf.mxu2 }
 0x2b7   : > { %v1280_v2 = vmax.f32 %v1191_v0, 0.0  ;;  %v1616_v3 = vadd.f32 %v2533_v32, %v1615_v1 }
 0x2b9   : > { %1737 = vst [vmem:[%s2539_s17 + $0x118] sm:$0xff] %v1616_v3  ;;  %2031 = vmatmul.msk.f32.gmra.mxu3 %vm827_vm2, %v1280_v2 }
 0x2bc   : > { %v1193_v21 = vpop.f32.mrf.mxu3 }
 0x2bd   : > { %v1194_v6 = vadd.f32 %v2728_v18, %v1193_v21 }
 0x2be   : > { %v1618_v10 = vpop.f32.mrf.mxu2 }
 0x2bf   : > { %v1281_v5 = vmax.f32 %v1194_v6, 0.0  ;;  %v1619_v12 = vadd.f32 %v2533_v32, %v1618_v10 }
 0x2c1   : > { %1738 = vst [vmem:[%s2539_s17 + $0x120] sm:$0xff] %v1619_v12  ;;  %2032 = vmatmul.msk.f32.gmra.mxu3 %vm827_vm2, %v1281_v5 }
 0x2c4   : > { %v1196_v7 = vpop.f32.mrf.mxu3 }
 0x2c5   : > { %v1197_v8 = vadd.f32 %v2728_v18, %v1196_v7 }
 0x2c6   : > { %v1621_v9 = vpop.f32.mrf.mxu2 }
 0x2c7   : > { %v1282_v13 = vmax.f32 %v1197_v8, 0.0  ;;  %v1622_v11 = vadd.f32 %v2533_v32, %v1621_v9 }
 0x2c9   : > { %1739 = vst [vmem:[%s2539_s17 + $0x128] sm:$0xff] %v1622_v11  ;;  %2033 = vmatmul.msk.f32.gmra.mxu3 %vm827_vm2, %v1282_v13 }
 0x2cc   : > { %v1199_v14 = vpop.f32.mrf.mxu3 }
 0x2cd   : > { %v1200_v15 = vadd.f32 %v2728_v18, %v1199_v14 }
 0x2ce   : > { %v1624_v16 = vpop.f32.mrf.mxu2 }
 0x2cf   : > { %v1283_v17 = vmax.f32 %v1200_v15, 0.0  ;;  %v1625_v27 = vadd.f32 %v2533_v32, %v1624_v16 }
 0x2d1   : > { %1740 = vst [vmem:[%s2539_s17 + $0x130] sm:$0xff] %v1625_v27  ;;  %2034 = vmatmul.msk.f32.gmra.mxu3 %vm827_vm2, %v1283_v17 }
 0x2d4   : > { %v1202_v19 = vpop.f32.mrf.mxu3 }
 0x2d5   : > { %v1203_v20 = vadd.f32 %v2728_v18, %v1202_v19 }
 0x2d6   : > { %v1627_v22 = vpop.f32.mrf.mxu2 }
 0x2d7   : > { %v1284_v23 = vmax.f32 %v1203_v20, 0.0  ;;  %v1628_v24 = vadd.f32 %v2533_v32, %v1627_v22 }
 0x2d9   : > { %1741 = vst [vmem:[%s2539_s17 + $0x138] sm:$0xff] %v1628_v24  ;;  %2035 = vmatmul.msk.f32.gmra.mxu3 %vm827_vm2, %v1284_v23 }
 0x2dc   : > { %v1205_v25 = vpop.f32.mrf.mxu3 }
 0x2dd   : > { %v1206_v26 = vadd.f32 %v2728_v18, %v1205_v25  ;;  %v2105_v25 = vld [vmem:[%s2889_s6] ss:$0 sm:$0xff] }
 0x2de   : > { %v1630_v28 = vpop.f32.mrf.mxu2 }
 0x2df   : > { %v1285_v29 = vmax.f32 %v1206_v26, 0.0  ;;  %v1631_v30 = vadd.f32 %v2533_v32, %v1630_v28 }
 0x2e1   : > { %1742 = vst [vmem:[%s2539_s17 + $0x140] sm:$0xff] %v1631_v30  ;;  %2036 = vmatmul.msk.f32.gmra.mxu3 %vm827_vm2, %v1285_v29 }
 0x2e4   : > { %v1208_v31 = vpop.f32.mrf.mxu3 }
 0x2e5   : > { %v1209_v33 = vadd.f32 %v2728_v18, %v1208_v31 }
 0x2e6   : > { %v1633_v34 = vpop.f32.mrf.mxu2 }
 0x2e7   : > { %v1286_v35 = vmax.f32 %v1209_v33, 0.0  ;;  %v1634_v36 = vadd.f32 %v2533_v32, %v1633_v34 }
 0x2e9   : > { %1743 = vst [vmem:[%s2539_s17 + $0x148] sm:$0xff] %v1634_v36  ;;  %2037 = vmatmul.msk.f32.gmra.mxu3 %vm827_vm2, %v1286_v35 }
 0x2ec   : > { %v1211_v37 = vpop.f32.mrf.mxu3 }
 0x2ed   : > { %v1212_v38 = vadd.f32 %v2728_v18, %v1211_v37 }
 0x2ee   : > { %v1636_v39 = vpop.f32.mrf.mxu2 }
 0x2ef   : > { %v1287_v40 = vmax.f32 %v1212_v38, 0.0  ;;  %v1637_v41 = vadd.f32 %v2533_v32, %v1636_v39 }
 0x2f1   : > { %1744 = vst [vmem:[%s2539_s17 + $0x150] sm:$0xff] %v1637_v41  ;;  %2038 = vmatmul.msk.f32.gmra.mxu3 %vm827_vm2, %v1287_v40 }
 0x2f4   : > { %v1214_v42 = vpop.f32.mrf.mxu3 }
 0x2f5   : > { %v1215_v43 = vadd.f32 %v2728_v18, %v1214_v42 }
 0x2f6   : > { %v1639_v44 = vpop.f32.mrf.mxu2 }
 0x2f7   : > { %v1288_v45 = vmax.f32 %v1215_v43, 0.0  ;;  %v1640_v46 = vadd.f32 %v2533_v32, %v1639_v44 }
 0x2f9   : > { %1745 = vst [vmem:[%s2539_s17 + $0x158] sm:$0xff] %v1640_v46  ;;  %2039 = vmatmul.msk.f32.gmra.mxu3 %vm827_vm2, %v1288_v45 }
 0x2fc   : > { %v1217_v47 = vpop.f32.mrf.mxu3 }
 0x2fd   : > { %v1218_v4 = vadd.f32 %v2728_v18, %v1217_v47 }
 0x2fe   : > { %v1642_v48 = vpop.f32.mrf.mxu2 }
 0x2ff   : > { %v1289_v49 = vmax.f32 %v1218_v4, 0.0  ;;  %v1643_v50 = vadd.f32 %v2533_v32, %v1642_v48 }
 0x301   : > { %1746 = vst [vmem:[%s2539_s17 + $0x160] sm:$0xff] %v1643_v50  ;;  %2040 = vmatmul.msk.f32.gmra.mxu3 %vm827_vm2, %v1289_v49 }
 0x304   : > { %v1220_v51 = vpop.f32.mrf.mxu3 }
 0x305   : > { %v1221_v52 = vadd.f32 %v2728_v18, %v1220_v51 }
 0x306   : > { %v1645_v53 = vpop.f32.mrf.mxu2 }
 0x307   : > { %v1290_v54 = vmax.f32 %v1221_v52, 0.0  ;;  %v1646_v55 = vadd.f32 %v2533_v32, %v1645_v53 }
 0x309   : > { %1747 = vst [vmem:[%s2539_s17 + $0x168] sm:$0xff] %v1646_v55  ;;  %2041 = vmatmul.msk.f32.gmra.mxu3 %vm827_vm2, %v1290_v54 }
 0x30c   : > { %v1223_v56 = vpop.f32.mrf.mxu3 }
 0x30d   : > { %v1224_v57 = vadd.f32 %v2728_v18, %v1223_v56 }
 0x30e   : > { %v1648_v58 = vpop.f32.mrf.mxu2 }
 0x30f   : > { %v1291_v59 = vmax.f32 %v1224_v57, 0.0  ;;  %v1649_v60 = vadd.f32 %v2533_v32, %v1648_v58 }
 0x311   : > { %1748 = vst [vmem:[%s2539_s17 + $0x170] sm:$0xff] %v1649_v60  ;;  %2042 = vmatmul.msk.f32.gmra.mxu3 %vm827_vm2, %v1291_v59 }
 0x314   : > { %v1226_v61 = vpop.f32.mrf.mxu3 }
 0x315   : > { %v1227_v62 = vadd.f32 %v2728_v18, %v1226_v61 }
 0x316   : > { %v1651_v63 = vpop.f32.mrf.mxu2 }
 0x317   : > { %v1292_v0 = vmax.f32 %v1227_v62, 0.0  ;;  %v1652_v1 = vadd.f32 %v2533_v32, %v1651_v63 }
 0x319   : > { %1749 = vst [vmem:[%s2539_s17 + $0x178] sm:$0xff] %v1652_v1  ;;  %2043 = vmatmul.msk.f32.gmra.mxu3 %vm827_vm2, %v1292_v0 }
 0x324   : > { %v1654_v2 = vpop.f32.mrf.mxu3 }
 0x325   : > { %v1655_v3 = vadd.f32 %v2533_v32, %v1654_v2 }
 0x327   : > { %1750 = vst [vmem:[%s2539_s17 + $0x180] sm:$0xff] %v1655_v3 }
 0x32c   : > { %v1657_v21 = vpop.f32.mrf.mxu3 }
 0x32d   : > { %v1658_v6 = vadd.f32 %v2533_v32, %v1657_v21 }
 0x32f   : > { %1751 = vst [vmem:[%s2539_s17 + $0x188] sm:$0xff] %v1658_v6 }
 0x334   : > { %v1660_v18 = vpop.f32.mrf.mxu3 }
 0x335   : > { %v1661_v10 = vadd.f32 %v2533_v32, %v1660_v18 }
 0x337   : > { %1752 = vst [vmem:[%s2539_s17 + $0x190] sm:$0xff] %v1661_v10 }
 0x33c   : > { %v1663_v5 = vpop.f32.mrf.mxu3 }
 0x33d   : > { %v1664_v12 = vadd.f32 %v2533_v32, %v1663_v5 }
 0x33f   : > { %1753 = vst [vmem:[%s2539_s17 + $0x198] sm:$0xff] %v1664_v12 }
 0x344   : > { %v1666_v7 = vpop.f32.mrf.mxu3 }
 0x345   : > { %v1667_v8 = vadd.f32 %v2533_v32, %v1666_v7 }
 0x347   : > { %1754 = vst [vmem:[%s2539_s17 + $0x1a0] sm:$0xff] %v1667_v8 }
 0x34c   : > { %v1669_v9 = vpop.f32.mrf.mxu3 }
 0x34d   : > { %v1670_v13 = vadd.f32 %v2533_v32, %v1669_v9 }
 0x34f   : > { %1755 = vst [vmem:[%s2539_s17 + $0x1a8] sm:$0xff] %v1670_v13 }
 0x354   : > { %v1672_v11 = vpop.f32.mrf.mxu3 }
 0x355   : > { %v1673_v14 = vadd.f32 %v2533_v32, %v1672_v11 }
 0x357   : > { %1756 = vst [vmem:[%s2539_s17 + $0x1b0] sm:$0xff] %v1673_v14 }
 0x35c   : > { %v1675_v15 = vpop.f32.mrf.mxu3 }
 0x35d   : > { %v1676_v16 = vadd.f32 %v2533_v32, %v1675_v15 }
 0x35f   : > { %1757 = vst [vmem:[%s2539_s17 + $0x1b8] sm:$0xff] %v1676_v16 }
 0x364   : > { %v1678_v17 = vpop.f32.mrf.mxu3 }
 0x365   : > { %v1679_v27 = vadd.f32 %v2533_v32, %v1678_v17 }
 0x367   : > { %1758 = vst [vmem:[%s2539_s17 + $0x1c0] sm:$0xff] %v1679_v27 }
 0x36c   : > { %v1681_v19 = vpop.f32.mrf.mxu3 }
 0x36d   : > { %v1682_v20 = vadd.f32 %v2533_v32, %v1681_v19 }
 0x36f   : > { %1759 = vst [vmem:[%s2539_s17 + $0x1c8] sm:$0xff] %v1682_v20 }
 0x374   : > { %v1684_v22 = vpop.f32.mrf.mxu3 }
 0x375   : > { %v1685_v23 = vadd.f32 %v2533_v32, %v1684_v22 }
 0x377   : > { %1760 = vst [vmem:[%s2539_s17 + $0x1d0] sm:$0xff] %v1685_v23 }
 0x37c   : > { %v1687_v24 = vpop.f32.mrf.mxu3 }
 0x37d   : > { %v1688_v26 = vadd.f32 %v2105_v25, %v1687_v24 }
 0x37f   : > { %1761 = vst [vmem:[%s2539_s17 + $0x1d8] sm:$0xff] %v1688_v26 }
 0x384   : > { %v1690_v28 = vpop.f32.mrf.mxu3 }
 0x385   : > { %v1691_v29 = vadd.f32 %v2105_v25, %v1690_v28 }
 0x387   : > { %1762 = vst [vmem:[%s2539_s17 + $0x1e0] sm:$0xff] %v1691_v29 }
 0x38c   : > { %v1693_v30 = vpop.f32.mrf.mxu3 }
 0x38d   : > { %v1694_v31 = vadd.f32 %v2105_v25, %v1693_v30 }
 0x38f   : > { %1763 = vst [vmem:[%s2539_s17 + $0x1e8] sm:$0xff] %v1694_v31 }
 0x394   : > { %v1696_v32 = vpop.f32.mrf.mxu3 }
 0x395   : > { %v1697_v33 = vadd.f32 %v2105_v25, %v1696_v32 }
 0x397   : > { %1764 = vst [vmem:[%s2539_s17 + $0x1f0] sm:$0xff] %v1697_v33 }
 0x39c   : > { %v1699_v34 = vpop.f32.mrf.mxu3 }
 0x39d   : > { %v1700_v35 = vadd.f32 %v2105_v25, %v1699_v34 }
 0x39f   : > { %1765 = vst [vmem:[%s2539_s17 + $0x1f8] sm:$0xff] %v1700_v35 }
 0x3a0   : > { %2133 = shalt.err (!%p2130_p3)
}
 0x3a1   : > { %s2170_s13 = smov 128   ;;  %s2171_s17 = smov 8  }
 0x3a2   : > { %2059 = dma.vmem_to_hbm [thread:$0]  (%p2250_p5), %s1780_s15, 8192, %s1782_s16, %s1767_s19, %s2170_s13, %s2170_s13, %s2171_s17  }
 0x3a3 PF: > { %p2065_p4 = scmp.ge.s32.totalorder %s2168_s27, 2  ;;  %s1796_s8 = sand.u32 1, %s2156_s24  }
 0x3a4   : > { %s1797_s9 = scalar_lea.sflag [#allocation3], %s1796_s8 }
 0x3a5   : > { %p2062_p7 = pnand %p2065_p4, %p2254_p6 }
 0x3a7   : > { %p2063_p8 = pneg %p2062_p7 }
 0x3a9   : > { %2151 = dma.done.wait (%p2063_p8), %s1797_s9, 8192  }
 0x3aa   : > { %2153 = vsyncadd (%p2063_p8), %s1797_s9, 4294959104  ;;  %p17_p9 = scmp.ge.s32.totalorder %s2237_s30, 4   ;;  %s2893_s24 = smov %s2160_s25 }
 0x3ab   : > { %s2894_s25 = smov %s2164_s26  ;;  %s2895_s26 = smov %s2248_s10 }
 0x3ac   : > { %s2896_s27 = smov %s2237_s30  ;;  %19 = sbr.rel (!%p17_p9) target bundleno = 3 (0x3), region = 83 }
 0x3b1   :  { %1803 = vsyncpa [#allocation3], 1 }
 0x3b2   :  { %1805 = vsyncpa [#allocation3 + $0x1], 1 }

</bundles_post_ra>
